<compile_context>
chip_gen: v7x
topology: tpu7x:2x2x1
jax: 0.10.0
libtpu: 0.0.40
codegen_flags: <defaults>
</compile_context>

<pallas_src>
import numpy as np
import jax
import jax.numpy as jnp
from jax import lax
from jax.experimental import pallas as pl
from jax.experimental.pallas import tpu as pltpu


def _round_up(x, m):
    return (x + m - 1) // m * m


# ------------------------------ Pallas kernels ------------------------------

def _matmul_bias_relu_kernel(p_ref, w_ref, b_ref, o_ref, acc_ref):
    """Tiled conv-as-matmul with K-axis accumulation and bias+ReLU epilogue.

    Grid: (M tiles, Cout tiles, K tiles); K is the reduction axis.
    p_ref:   (tm, tk) bf16 input-patch tile
    w_ref:   (tk, tn) bf16 weight tile (BN scale pre-folded)
    b_ref:   (1, tn)  f32  folded BN bias
    o_ref:   (tm, tn) out-dtype output tile (f32 or bf16)
    acc_ref: (tm, tn) f32  VMEM accumulator (persists across K steps)
    """
    k = pl.program_id(2)
    prod = jnp.dot(p_ref[...], w_ref[...], preferred_element_type=jnp.float32)

    @pl.when(k == 0)
    def _():
        acc_ref[...] = prod            # direct write: no zero-init + add

    @pl.when(k > 0)
    def _():
        acc_ref[...] += prod

    @pl.when(k == pl.num_programs(2) - 1)
    def _():
        o_ref[...] = jnp.maximum(acc_ref[...] + b_ref[...], 0.0).astype(o_ref.dtype)


def _maxpool_3x3_s1_kernel(x_ref, o_ref):
    """Stride-1 valid 3x3 max pool on one (image, channel-tile) block.

    Uses only contiguous value slices + elementwise max (no strided ref reads).
    x_ref: (1, H, W, tc) -> o_ref: (1, H-2, W-2, tc)
    """
    x = x_ref[0]                       # (H, W, tc)
    h, w, _ = x.shape
    mw = jnp.maximum(jnp.maximum(x[:, 0:w - 2, :], x[:, 1:w - 1, :]),
                     x[:, 2:w, :])                     # (H, W-2, tc)
    o_ref[0] = jnp.maximum(jnp.maximum(mw[0:h - 2], mw[1:h - 1]),
                           mw[2:h])                    # (H-2, W-2, tc)


# ------------------------------ layer wrappers -------------------------------

def conv_bn_relu(x, w, scale, bias, *, stride, padding,
                 out_dtype=jnp.float32, tm_max=512, tk_max=512):
    """x: (N,H,W,Cin), w: (KH,KW,Cin,Cout). Conv(no bias) + BN(eval) + ReLU."""
    N, H, W, Cin = x.shape
    KH, KW, _, Cout = w.shape
    sh, sw = stride
    ph, pw = padding
    HO = (H + 2 * ph - KH) // sh + 1
    WO = (W + 2 * pw - KW) // sw + 1
    M = N * HO * WO
    K = KH * KW * Cin

    xb = x.astype(jnp.bfloat16)
    if KH == 1 and KW == 1 and (sh, sw) == (1, 1) and (ph, pw) == (0, 0):
        # 1x1 stride-1 conv: pure reshape, no im2col / no duplicated HBM copy.
        patches = xb.reshape(M, K)
    else:
        # TODO(synk): stream taps from the padded input inside the kernel
        # (tap axis in the grid) instead of materializing patches in HBM.
        xp = jnp.pad(xb, ((0, 0), (ph, ph), (pw, pw), (0, 0)))
        taps = []
        for kh in range(KH):
            for kw in range(KW):
                taps.append(xp[:, kh:kh + sh * (HO - 1) + 1:sh,
                               kw:kw + sw * (WO - 1) + 1:sw, :])
        patches = jnp.concatenate(taps, axis=-1).reshape(M, K)

    # Fold the BN scale into the weights; only bias + ReLU remain in-kernel.
    wmat = (w.reshape(K, Cout) * scale[None, :]).astype(jnp.bfloat16)

    # Tile sizes + lane-dense / (8,128)-aligned padding.
    tn = 256 if Cout % 256 == 0 else 128
    tm = min(tm_max, _round_up(M, 8))
    tk = min(tk_max, _round_up(K, 128))
    Mp = _round_up(M, tm)
    Kp = _round_up(K, tk)
    Np = _round_up(Cout, tn)

    patches = jnp.pad(patches, ((0, Mp - M), (0, Kp - K)))
    wmat = jnp.pad(wmat, ((0, Kp - K), (0, Np - Cout)))
    bvec = jnp.pad(bias, (0, Np - Cout)).reshape(1, Np).astype(jnp.float32)

    grid = (Mp // tm, Np // tn, Kp // tk)
    out_itemsize = jnp.dtype(out_dtype).itemsize
    out = pl.pallas_call(
        _matmul_bias_relu_kernel,
        out_shape=jax.ShapeDtypeStruct((Mp, Np), out_dtype),
        grid=grid,
        in_specs=[
            pl.BlockSpec((tm, tk), lambda i, j, k: (i, k)),
            pl.BlockSpec((tk, tn), lambda i, j, k: (k, j)),
            pl.BlockSpec((1, tn), lambda i, j, k: (0, j)),
        ],
        out_specs=pl.BlockSpec((tm, tn), lambda i, j, k: (i, j)),
        scratch_shapes=[pltpu.VMEM((tm, tn), jnp.float32)],
        compiler_params=pltpu.CompilerParams(
            dimension_semantics=("parallel", "parallel", "arbitrary"),
            vmem_limit_bytes=32 * 1024 * 1024),
        cost_estimate=pl.CostEstimate(
            flops=2 * Mp * Kp * Np,
            transcendentals=0,
            bytes_accessed=Mp * Kp * 2 + Kp * Np * 2
            + Mp * Np * out_itemsize + Np * 4),
    )(patches, wmat, bvec)
    return out[:M, :Cout].reshape(N, HO, WO, Cout)


def maxpool_3x3_s2(x):
    """nn.MaxPool2d(3, stride=2) (no padding), NHWC input."""
    N, H, W, C = x.shape
    HO = (H - 3) // 2 + 1
    WO = (W - 3) // 2 + 1
    tc = C
    for cand in (512, 256, 128):
        if C % cand == 0:
            tc = cand
            break
    s1 = pl.pallas_call(
        _maxpool_3x3_s1_kernel,
        out_shape=jax.ShapeDtypeStruct((N, H - 2, W - 2, C), x.dtype),
        grid=(N, C // tc),
        in_specs=[pl.BlockSpec((1, H, W, tc), lambda n, c: (n, 0, 0, c))],
        out_specs=pl.BlockSpec((1, H - 2, W - 2, tc), lambda n, c: (n, 0, 0, c)),
        compiler_params=pltpu.CompilerParams(
            dimension_semantics=("parallel", "parallel"),
            vmem_limit_bytes=32 * 1024 * 1024),
    )(x)
    # Stride-2 subsample of the stride-1 pooled map (exactly MaxPool2d(3, 2)).
    return s1[:, 0:2 * HO - 1:2, 0:2 * WO - 1:2, :]


# -------------------------- Reduction_B forward pass -------------------------

def _branches(x_nhwc, params, conv_fn, pool_fn):
    bf16 = jnp.bfloat16
    f32 = jnp.float32

    b0 = conv_fn(x_nhwc, **params["b0_0"], stride=(1, 1), padding=(0, 0),
                 out_dtype=bf16)
    b0 = conv_fn(b0, **params["b0_1"], stride=(2, 2), padding=(0, 0),
                 out_dtype=f32)

    b1 = conv_fn(x_nhwc, **params["b1_0"], stride=(1, 1), padding=(0, 0),
                 out_dtype=bf16)
    b1 = conv_fn(b1, **params["b1_1"], stride=(1, 1), padding=(0, 3),   # 1x7
                 out_dtype=bf16)
    b1 = conv_fn(b1, **params["b1_2"], stride=(1, 1), padding=(3, 0),   # 7x1
                 out_dtype=bf16)
    b1 = conv_fn(b1, **params["b1_3"], stride=(2, 2), padding=(0, 0),
                 out_dtype=f32)

    b2 = pool_fn(x_nhwc)
    return jnp.concatenate([b0, b1, b2], axis=-1)


def reduction_b_forward(x_nchw, params):
    x = jnp.transpose(x_nchw, (0, 2, 3, 1))            # NCHW -> NHWC
    out = _branches(x, params, conv_bn_relu, maxpool_3x3_s2)
    return jnp.transpose(out, (0, 3, 1, 2))            # NHWC -> NCHW


# ------------------------------ pure-JAX reference ---------------------------

def _ref_conv_bn_relu(x, w, scale, bias, *, stride, padding,
                      out_dtype=jnp.float32):
    # Quantize inputs / folded weights to bf16 exactly as the kernel does;
    # accumulate in f32; cast the output like the kernel epilogue.
    xq = x.astype(jnp.bfloat16).astype(jnp.float32)
    wq = (w * scale).astype(jnp.bfloat16).astype(jnp.float32)
    y = lax.conv_general_dilated(
        xq, wq, window_strides=stride,
        padding=[(padding[0], padding[0]), (padding[1], padding[1])],
        dimension_numbers=("NHWC", "HWIO", "NHWC"),
        precision=lax.Precision.HIGHEST)
    return jnp.maximum(y + bias, 0.0).astype(out_dtype)


def _ref_maxpool_3x3_s2(x):
    return lax.reduce_window(x, -jnp.inf, lax.max,
                             (1, 3, 3, 1), (1, 2, 2, 1), "VALID")


def reduction_b_reference(x_nchw, params):
    x = jnp.transpose(x_nchw, (0, 2, 3, 1))
    out = _branches(x, params, _ref_conv_bn_relu, _ref_maxpool_3x3_s2)
    return jnp.transpose(out, (0, 3, 1, 2))


# ------------------------------ parameter init -------------------------------

def init_basic_conv(key, cin, cout, kh, kw, eps=1e-3):
    kwt, kg, kb, kmu, kvar = jax.random.split(key, 5)
    fan_in = kh * kw * cin
    weight = jax.random.normal(kwt, (kh, kw, cin, cout), jnp.float32) / np.sqrt(fan_in)
    gamma = 1.0 + 0.1 * jax.random.normal(kg, (cout,), jnp.float32)
    beta = 0.1 * jax.random.normal(kb, (cout,), jnp.float32)
    running_mean = 0.1 * jax.random.normal(kmu, (cout,), jnp.float32)
    running_var = 0.5 + jnp.abs(jax.random.normal(kvar, (cout,), jnp.float32))
    scale = gamma / jnp.sqrt(running_var + eps)     # BN eps = 0.001 as in module
    bias = beta - running_mean * scale
    return {"w": weight, "scale": scale, "bias": bias}


# ----------------------------------- main ------------------------------------

if __name__ == "__main__":
    key = jax.random.PRNGKey(0)
    keys = jax.random.split(key, 7)

    # Small synthetic shapes: m() shrinks Inception channel counts by 32x.
    m = lambda c: c // 32            # m(192)=6, m(256)=8, m(320)=10
    in_features = 8
    N, H, W = 2, 16, 16

    params = {
        "b0_0": init_basic_conv(keys[0], in_features, m(192), 1, 1),
        "b0_1": init_basic_conv(keys[1], m(192), m(192), 3, 3),
        "b1_0": init_basic_conv(keys[2], in_features, m(256), 1, 1),
        "b1_1": init_basic_conv(keys[3], m(256), m(256), 1, 7),
        "b1_2": init_basic_conv(keys[4], m(256), m(320), 7, 1),
        "b1_3": init_basic_conv(keys[5], m(320), m(320), 3, 3),
    }
    x = jax.random.normal(keys[6], (N, in_features, H, W), jnp.float32)

    fwd = jax.jit(reduction_b_forward)
    out = jax.block_until_ready(fwd(x, params))

    out_channels = m(192) + m(320) + in_features
    assert out.shape == (N, out_channels, 7, 7), out.shape

    ref = reduction_b_reference(x, params)
    np.testing.assert_allclose(np.asarray(out), np.asarray(ref),
                               rtol=2e-2, atol=2e-2)
    print("KERNEL_OK")
</pallas_src>

<mosaic_0001>
module attributes {stable_mosaic.version = 11 : i64} {
  func.func @_maxpool_3x3_s1_kernel(%arg0: i32, %arg1: i32, %arg2: memref<1x16x16x8xf32, #tpu.memory_space<vmem>>, %arg3: memref<1x14x14x8xf32, #tpu.memory_space<vmem>>) attributes {dimension_semantics = [#tpu.dimension_semantics<parallel>, #tpu.dimension_semantics<parallel>], iteration_bounds = array<i64: 2, 1>, scalar_prefetch = 0 : i64, scratch_operands = 0 : i64, tpu.core_type = #tpu.core_type<tc>, window_params = [{transform_indices = @transform_0, window_bounds = array<i64: 1, 16, 16, 8>}, {transform_indices = @transform_1, window_bounds = array<i64: 1, 14, 14, 8>}]} {
    %c0 = arith.constant 0 : index
    %c0_0 = arith.constant 0 : index
    %c0_1 = arith.constant 0 : index
    %c0_2 = arith.constant 0 : index
    %0 = vector.load %arg2[%c0, %c0_0, %c0_1, %c0_2] : memref<1x16x16x8xf32, #tpu.memory_space<vmem>>, vector<1x16x16x8xf32>
    %1 = vector.shape_cast %0 : vector<1x16x16x8xf32> to vector<16x16x8xf32>
    %2 = vector.extract_strided_slice %1 {offsets = [0, 0, 0], sizes = [16, 14, 8], strides = [1, 1, 1]} : vector<16x16x8xf32> to vector<16x14x8xf32>
    %3 = vector.extract_strided_slice %1 {offsets = [0, 1, 0], sizes = [16, 14, 8], strides = [1, 1, 1]} : vector<16x16x8xf32> to vector<16x14x8xf32>
    %4 = arith.maximumf %2, %3 : vector<16x14x8xf32>
    %5 = vector.extract_strided_slice %1 {offsets = [0, 2, 0], sizes = [16, 14, 8], strides = [1, 1, 1]} : vector<16x16x8xf32> to vector<16x14x8xf32>
    %6 = arith.maximumf %4, %5 : vector<16x14x8xf32>
    %7 = vector.extract_strided_slice %6 {offsets = [0, 0, 0], sizes = [14, 14, 8], strides = [1, 1, 1]} : vector<16x14x8xf32> to vector<14x14x8xf32>
    %8 = vector.extract_strided_slice %6 {offsets = [1, 0, 0], sizes = [14, 14, 8], strides = [1, 1, 1]} : vector<16x14x8xf32> to vector<14x14x8xf32>
    %9 = arith.maximumf %7, %8 : vector<14x14x8xf32>
    %10 = vector.extract_strided_slice %6 {offsets = [2, 0, 0], sizes = [14, 14, 8], strides = [1, 1, 1]} : vector<16x14x8xf32> to vector<14x14x8xf32>
    %11 = arith.maximumf %9, %10 : vector<14x14x8xf32>
    %c0_3 = arith.constant 0 : index
    %c0_4 = arith.constant 0 : index
    %c0_5 = arith.constant 0 : index
    %c0_6 = arith.constant 0 : index
    %12 = vector.load %arg3[%c0_3, %c0_4, %c0_5, %c0_6] : memref<1x14x14x8xf32, #tpu.memory_space<vmem>>, vector<1x14x14x8xf32>
    %13 = vector.shape_cast %12 : vector<1x14x14x8xf32> to vector<14x14x8xf32>
    %14 = vector.shape_cast %11 : vector<14x14x8xf32> to vector<1x14x14x8xf32>
    tpu.vector_store %arg3[%c0_3, %c0_4, %c0_5, %c0_6], %14 {strides = array<i32>} : memref<1x14x14x8xf32, #tpu.memory_space<vmem>>, vector<1x14x14x8xf32>,
    return
  }
  func.func @transform_0(%arg0: i32, %arg1: i32) -> (i32, i32, i32, i32) {
    %c0_i32 = arith.constant 0 : i32
    %c0_i32_0 = arith.constant 0 : i32
    %c0_i32_1 = arith.constant 0 : i32
    return %arg0, %c0_i32, %c0_i32_0, %arg1 : i32, i32, i32, i32
  }
  func.func @transform_1(%arg0: i32, %arg1: i32) -> (i32, i32, i32, i32) {
    %c0_i32 = arith.constant 0 : i32
    %c0_i32_0 = arith.constant 0 : i32
    %c0_i32_1 = arith.constant 0 : i32
    return %arg0, %c0_i32, %c0_i32_0, %arg1 : i32, i32, i32, i32
  }
}

module attributes {stable_mosaic.version = 11 : i64} {
  func.func @_matmul_bias_relu_kernel(%arg0: i32, %arg1: i32, %arg2: i32, %arg3: memref<512x128xbf16, #tpu.memory_space<vmem>>, %arg4: memref<128x128xbf16, #tpu.memory_space<vmem>>, %arg5: memref<1x128xf32, #tpu.memory_space<vmem>>, %arg6: memref<512x128xbf16, #tpu.memory_space<vmem>>, %arg7: memref<512x128xf32, #tpu.memory_space<vmem>>) attributes {dimension_semantics = [#tpu.dimension_semantics<parallel>, #tpu.dimension_semantics<parallel>, #tpu.dimension_semantics<arbitrary>], iteration_bounds = array<i64: 1, 1, 1>, scalar_prefetch = 0 : i64, scratch_operands = 1 : i64, tpu.core_type = #tpu.core_type<tc>, window_params = [{transform_indices = @transform_0, window_bounds = array<i64: 512, 128>}, {transform_indices = @transform_1, window_bounds = array<i64: 128, 128>}, {transform_indices = @transform_2, window_bounds = array<i64: 1, 128>}, {transform_indices = @transform_3, window_bounds = array<i64: 512, 128>}]} {
    %c0 = arith.constant 0 : index
    %c0_0 = arith.constant 0 : index
    %0 = vector.load %arg3[%c0, %c0_0] : memref<512x128xbf16, #tpu.memory_space<vmem>>, vector<512x128xbf16>
    %c0_1 = arith.constant 0 : index
    %c0_2 = arith.constant 0 : index
    %1 = vector.load %arg4[%c0_1, %c0_2] : memref<128x128xbf16, #tpu.memory_space<vmem>>, vector<128x128xbf16>
    %cst = arith.constant dense<0.000000e+00> : vector<512x128xf32>
    %2 = tpu.matmul %0, %1, %cst {dimension_numbers = #tpu.dot_dimension_numbers<[1], [0], [0], [1], [0, 0, 1, 1], [], []>} : vector<512x128xbf16>, vector<128x128xbf16>, vector<512x128xf32> -> vector<512x128xf32>
    %c0_i32 = arith.constant 0 : i32
    %3 = arith.cmpi eq, %arg2, %c0_i32 : i32
    %4 = arith.extui %3 : i1 to i32
    %c0_i32_3 = arith.constant 0 : i32
    %5 = arith.cmpi ne, %4, %c0_i32_3 : i32
    scf.if %5 {
      %c0_8 = arith.constant 0 : index
      %c0_9 = arith.constant 0 : index
      %12 = vector.load %arg7[%c0_8, %c0_9] : memref<512x128xf32, #tpu.memory_space<vmem>>, vector<512x128xf32>
      tpu.vector_store %arg7[%c0_8, %c0_9], %2 {strides = array<i32>} : memref<512x128xf32, #tpu.memory_space<vmem>>, vector<512x128xf32>,
    } else {
    }
    %c0_i32_4 = arith.constant 0 : i32
    %6 = arith.cmpi sgt, %arg2, %c0_i32_4 : i32
    %7 = arith.extui %6 : i1 to i32
    %c0_i32_5 = arith.constant 0 : i32
    %8 = arith.cmpi ne, %7, %c0_i32_5 : i32
    scf.if %8 {
      %c0_8 = arith.constant 0 : index
      %c0_9 = arith.constant 0 : index
      %12 = vector.load %arg7[%c0_8, %c0_9] : memref<512x128xf32, #tpu.memory_space<vmem>>, vector<512x128xf32>
      %13 = arith.addf %12, %2 : vector<512x128xf32>
      %c0_10 = arith.constant 0 : index
      %c0_11 = arith.constant 0 : index
      %14 = vector.load %arg7[%c0_10, %c0_11] : memref<512x128xf32, #tpu.memory_space<vmem>>, vector<512x128xf32>
      tpu.vector_store %arg7[%c0_10, %c0_11], %13 {strides = array<i32>} : memref<512x128xf32, #tpu.memory_space<vmem>>, vector<512x128xf32>,
    } else {
    }
    %c0_i32_6 = arith.constant 0 : i32
    %9 = arith.cmpi eq, %arg2, %c0_i32_6 : i32
    %10 = arith.extui %9 : i1 to i32
    %c0_i32_7 = arith.constant 0 : i32
    %11 = arith.cmpi ne, %10, %c0_i32_7 : i32
    scf.if %11 {
      %c0_8 = arith.constant 0 : index
      %c0_9 = arith.constant 0 : index
      %12 = vector.load %arg7[%c0_8, %c0_9] : memref<512x128xf32, #tpu.memory_space<vmem>>, vector<512x128xf32>
      %c0_10 = arith.constant 0 : index
      %c0_11 = arith.constant 0 : index
      %13 = vector.load %arg5[%c0_10, %c0_11] : memref<1x128xf32, #tpu.memory_space<vmem>>, vector<1x128xf32>
      %14 = vector.broadcast %13 : vector<1x128xf32> to vector<512x128xf32>
      %15 = arith.addf %12, %14 : vector<512x128xf32>
      %cst_12 = arith.constant 0.000000e+00 : f32
      %16 = vector.broadcast %cst_12 : f32 to vector<512x128xf32>
      %17 = arith.maximumf %15, %16 : vector<512x128xf32>
      %18 = arith.truncf %17 : vector<512x128xf32> to vector<512x128xbf16>
      %c0_13 = arith.constant 0 : index
      %c0_14 = arith.constant 0 : index
      %19 = vector.load %arg6[%c0_13, %c0_14] : memref<512x128xbf16, #tpu.memory_space<vmem>>, vector<512x128xbf16>
      tpu.vector_store %arg6[%c0_13, %c0_14], %18 {strides = array<i32>} : memref<512x128xbf16, #tpu.memory_space<vmem>>, vector<512x128xbf16>,
    } else {
    }
    return
  }
  func.func @transform_0(%arg0: i32, %arg1: i32, %arg2: i32) -> (i32, i32) {
    %c0_i32 = arith.constant 0 : i32
    return %arg0, %arg2 : i32, i32
  }
  func.func @transform_1(%arg0: i32, %arg1: i32, %arg2: i32) -> (i32, i32) {
    %c0_i32 = arith.constant 0 : i32
    return %arg2, %arg1 : i32, i32
  }
  func.func @transform_2(%arg0: i32, %arg1: i32, %arg2: i32) -> (i32, i32) {
    %c0_i32 = arith.constant 0 : i32
    %c0_i32_0 = arith.constant 0 : i32
    return %c0_i32, %arg1 : i32, i32
  }
  func.func @transform_3(%arg0: i32, %arg1: i32, %arg2: i32) -> (i32, i32) {
    %c0_i32 = arith.constant 0 : i32
    return %arg0, %arg1 : i32, i32
  }
}

module attributes {stable_mosaic.version = 11 : i64} {
  func.func @_matmul_bias_relu_kernel(%arg0: i32, %arg1: i32, %arg2: i32, %arg3: memref<104x128xbf16, #tpu.memory_space<vmem>>, %arg4: memref<128x128xbf16, #tpu.memory_space<vmem>>, %arg5: memref<1x128xf32, #tpu.memory_space<vmem>>, %arg6: memref<104x128xf32, #tpu.memory_space<vmem>>, %arg7: memref<104x128xf32, #tpu.memory_space<vmem>>) attributes {dimension_semantics = [#tpu.dimension_semantics<parallel>, #tpu.dimension_semantics<parallel>, #tpu.dimension_semantics<arbitrary>], iteration_bounds = array<i64: 1, 1, 1>, scalar_prefetch = 0 : i64, scratch_operands = 1 : i64, tpu.core_type = #tpu.core_type<tc>, window_params = [{transform_indices = @transform_0, window_bounds = array<i64: 104, 128>}, {transform_indices = @transform_1, window_bounds = array<i64: 128, 128>}, {transform_indices = @transform_2, window_bounds = array<i64: 1, 128>}, {transform_indices = @transform_3, window_bounds = array<i64: 104, 128>}]} {
    %c0 = arith.constant 0 : index
    %c0_0 = arith.constant 0 : index
    %0 = vector.load %arg3[%c0, %c0_0] : memref<104x128xbf16, #tpu.memory_space<vmem>>, vector<104x128xbf16>
    %c0_1 = arith.constant 0 : index
    %c0_2 = arith.constant 0 : index
    %1 = vector.load %arg4[%c0_1, %c0_2] : memref<128x128xbf16, #tpu.memory_space<vmem>>, vector<128x128xbf16>
    %cst = arith.constant dense<0.000000e+00> : vector<104x128xf32>
    %2 = tpu.matmul %0, %1, %cst {dimension_numbers = #tpu.dot_dimension_numbers<[1], [0], [0], [1], [0, 0, 1, 1], [], []>} : vector<104x128xbf16>, vector<128x128xbf16>, vector<104x128xf32> -> vector<104x128xf32>
    %c0_i32 = arith.constant 0 : i32
    %3 = arith.cmpi eq, %arg2, %c0_i32 : i32
    %4 = arith.extui %3 : i1 to i32
    %c0_i32_3 = arith.constant 0 : i32
    %5 = arith.cmpi ne, %4, %c0_i32_3 : i32
    scf.if %5 {
      %c0_8 = arith.constant 0 : index
      %c0_9 = arith.constant 0 : index
      %12 = vector.load %arg7[%c0_8, %c0_9] : memref<104x128xf32, #tpu.memory_space<vmem>>, vector<104x128xf32>
      tpu.vector_store %arg7[%c0_8, %c0_9], %2 {strides = array<i32>} : memref<104x128xf32, #tpu.memory_space<vmem>>, vector<104x128xf32>,
    } else {
    }
    %c0_i32_4 = arith.constant 0 : i32
    %6 = arith.cmpi sgt, %arg2, %c0_i32_4 : i32
    %7 = arith.extui %6 : i1 to i32
    %c0_i32_5 = arith.constant 0 : i32
    %8 = arith.cmpi ne, %7, %c0_i32_5 : i32
    scf.if %8 {
      %c0_8 = arith.constant 0 : index
      %c0_9 = arith.constant 0 : index
      %12 = vector.load %arg7[%c0_8, %c0_9] : memref<104x128xf32, #tpu.memory_space<vmem>>, vector<104x128xf32>
      %13 = arith.addf %12, %2 : vector<104x128xf32>
      %c0_10 = arith.constant 0 : index
      %c0_11 = arith.constant 0 : index
      %14 = vector.load %arg7[%c0_10, %c0_11] : memref<104x128xf32, #tpu.memory_space<vmem>>, vector<104x128xf32>
      tpu.vector_store %arg7[%c0_10, %c0_11], %13 {strides = array<i32>} : memref<104x128xf32, #tpu.memory_space<vmem>>, vector<104x128xf32>,
    } else {
    }
    %c0_i32_6 = arith.constant 0 : i32
    %9 = arith.cmpi eq, %arg2, %c0_i32_6 : i32
    %10 = arith.extui %9 : i1 to i32
    %c0_i32_7 = arith.constant 0 : i32
    %11 = arith.cmpi ne, %10, %c0_i32_7 : i32
    scf.if %11 {
      %c0_8 = arith.constant 0 : index
      %c0_9 = arith.constant 0 : index
      %12 = vector.load %arg7[%c0_8, %c0_9] : memref<104x128xf32, #tpu.memory_space<vmem>>, vector<104x128xf32>
      %c0_10 = arith.constant 0 : index
      %c0_11 = arith.constant 0 : index
      %13 = vector.load %arg5[%c0_10, %c0_11] : memref<1x128xf32, #tpu.memory_space<vmem>>, vector<1x128xf32>
      %14 = vector.broadcast %13 : vector<1x128xf32> to vector<104x128xf32>
      %15 = arith.addf %12, %14 : vector<104x128xf32>
      %cst_12 = arith.constant 0.000000e+00 : f32
      %16 = vector.broadcast %cst_12 : f32 to vector<104x128xf32>
      %17 = arith.maximumf %15, %16 : vector<104x128xf32>
      %c0_13 = arith.constant 0 : index
      %c0_14 = arith.constant 0 : index
      %18 = vector.load %arg6[%c0_13, %c0_14] : memref<104x128xf32, #tpu.memory_space<vmem>>, vector<104x128xf32>
      tpu.vector_store %arg6[%c0_13, %c0_14], %17 {strides = array<i32>} : memref<104x128xf32, #tpu.memory_space<vmem>>, vector<104x128xf32>,
    } else {
    }
    return
  }
  func.func @transform_0(%arg0: i32, %arg1: i32, %arg2: i32) -> (i32, i32) {
    %c0_i32 = arith.constant 0 : i32
    return %arg0, %arg2 : i32, i32
  }
  func.func @transform_1(%arg0: i32, %arg1: i32, %arg2: i32) -> (i32, i32) {
    %c0_i32 = arith.constant 0 : i32
    return %arg2, %arg1 : i32, i32
  }
  func.func @transform_2(%arg0: i32, %arg1: i32, %arg2: i32) -> (i32, i32) {
    %c0_i32 = arith.constant 0 : i32
    %c0_i32_0 = arith.constant 0 : i32
    return %c0_i32, %arg1 : i32, i32
  }
  func.func @transform_3(%arg0: i32, %arg1: i32, %arg2: i32) -> (i32, i32) {
    %c0_i32 = arith.constant 0 : i32
    return %arg0, %arg1 : i32, i32
  }
}

</mosaic_0001>

<bundles_post_ra>
// kernel: reduction_b_forward.13
= control target key start
LH: loop header
LB: loop body
LE: loop exit
PB: predicated region body
PF: predicated region fallthrough
CT: control target
= control target key end

     0   :  { %s677_s6 = smov 0   ;;  %s679_s7 = smov 0   ;;  %s838_s0 = inlined_call_operand.vmem [shape: f32[2,16,16,8], index: 0, kind: input, shape index: {}]   ;;  %s839_s1 = inlined_call_operand.vmem [shape: f32[2,14,14,8], index: 1, kind: output, shape index: {}]  }
   0x1   :  { %s681_s8 = smov 0  }
   0x2 LB: > { %s23_s9 = sadd.s32 1, %s661_s7  ;;  %p611_p0 = scmp.ge.s32.totalorder %s665_s8, 1  ;;  %s665_s8 = sphi %s681_s8, %s11_s8   ;;  %s661_s7 = sphi %s679_s7, %s841_s7   ;;  %s657_s6 = sphi %s677_s6, %s840_s6  }
   0x3   : > { %p25_p1 = scmp.ge.s32.totalorder %s23_s9, 2  ;;  %p106_p2 = scmp.lt.s32.totalorder %s665_s8, 3 }
   0x5   : > { %s843_s9 = smov (%p25_p1, %s23_s9), 0  ;;  %p107_p3 = pnand %p611_p0, %p106_p2 }
   0x6   : > { %p132_p4 = scmp.lt.s32.totalorder (!%p107_p3), %s657_s6, 1  ;;  %vm212_vm0 = vcmask (!%p107_p3), 1046528   ;;  %vm325_vm1 = vcmask (!%p107_p3), 1045504   ;;  %vm494_vm2 = vcmask (!%p107_p3), 64512   ;;  %vm496_vm3 = vcmask (!%p107_p3), 62464  }
   0x7   : > { %110 = sbr.rel (%p107_p3) target bundleno = 78 (0x4e), region = 24 }
   0xe   : > { %s845_s6 = smov (!%p132_p4, %s657_s6), 1 }
   0xf   : > { %s617_s10 = sshll.u32 %s845_s6, 8  ;;  %s618_s14 = smul.u32 224, %s845_s6 }
  0x10   : > { %s701_s13 = scalar_lea.vmem %s838_s0, %s617_s10 }
  0x11   : > { %v148_v0 = vld [vmem:[%s701_s13] sm:$0xff]  ;;  %v149_v1 = vld [vmem:[%s701_s13 + $0x8] sm:$0xff]  ;;  %v150_v2 = vld [vmem:[%s701_s13 + $0x10] sm:$0xff]  ;;  %s724_s17 = scalar_lea.vmem %s839_s1, %s618_s14 }
  0x12   : > { %v151_v3 = vld [vmem:[%s701_s13 + $0x18] sm:$0xff]  ;;  %v152_v4 = vld [vmem:[%s701_s13 + $0x20] sm:$0xff]  ;;  %v153_v5 = vld [vmem:[%s701_s13 + $0x28] sm:$0xff]  ;;  %v213_v6 = vrot.slane %v148_v0, 1  ;;  %v214_v7 = vrot.slane %v149_v1, 1  ;;  %v216_v8 = vrot.slane %v150_v2, 1 }
  0x13   : > { %v217_v9 = vrot.slane %v151_v3, 1  ;;  %v219_v10 = vrot.slane %v152_v4, 1  ;;  %v220_v11 = vrot.slane %v153_v5, 1  ;;  %v326_v12 = vrot.slane %v148_v0, 2  ;;  %v154_v21 = vld [vmem:[%s701_s13 + $0x30] sm:$0xff]  ;;  %v155_v22 = vld [vmem:[%s701_s13 + $0x38] sm:$0xff] }
  0x14   : > { %v215_v13 = vsel %vm212_vm0, %v213_v6, %v214_v7  ;;  %v327_v14 = vrot.slane %v149_v1, 2  ;;  %v329_v15 = vrot.slane %v150_v2, 2  ;;  %v330_v16 = vrot.slane %v151_v3, 2  ;;  %v156_v39 = vld [vmem:[%s701_s13 + $0x40] sm:$0xff]  ;;  %v157_v44 = vld [vmem:[%s701_s13 + $0x48] sm:$0xff]  ;;  %v158_v49 = vld [vmem:[%s701_s13 + $0x50] sm:$0xff] }
  0x15   : > { %v218_v17 = vsel %vm212_vm0, %v216_v8, %v217_v9  ;;  %v221_v18 = vsel %vm212_vm0, %v219_v10, %v220_v11  ;;  %v293_v19 = vmax.f32 %v148_v0, %v215_v13  ;;  %v332_v20 = vrot.slane %v152_v4, 2  ;;  %v159_v61 = vld [vmem:[%s701_s13 + $0x58] sm:$0xff] }
  0x16   : > { %v295_v23 = vmax.f32 %v150_v2, %v218_v17  ;;  %v297_v24 = vmax.f32 %v152_v4, %v221_v18  ;;  %v328_v25 = vsel %vm325_vm1, %v326_v12, %v327_v14  ;;  %v331_v26 = vsel %vm325_vm1, %v329_v15, %v330_v16  ;;  %v161_v4 = vld [vmem:[%s701_s13 + $0x68] sm:$0xff] }
  0x17   : > { %v333_v27 = vrot.slane %v153_v5, 2  ;;  %v406_v28 = vmax.f32 %v293_v19, %v328_v25  ;;  %v294_v29 = vmax.f32 %v149_v1, %v214_v7  ;;  %v296_v30 = vmax.f32 %v151_v3, %v217_v9  ;;  %v160_v3 = vld [vmem:[%s701_s13 + $0x60] sm:$0xff] }
  0x18   : > { %v408_v31 = vmax.f32 %v295_v23, %v331_v26  ;;  %v298_v32 = vmax.f32 %v153_v5, %v220_v11  ;;  %v222_v33 = vrot.slane %v154_v21, 1  ;;  %v223_v34 = vrot.slane %v155_v22, 1 }
  0x19   : > { %v334_v35 = vsel %vm325_vm1, %v332_v20, %v333_v27  ;;  %v407_v36 = vmax.f32 %v294_v29, %v327_v14  ;;  %v409_v37 = vmax.f32 %v296_v30, %v330_v16  ;;  %v335_v38 = vrot.slane %v154_v21, 2 }
  0x1a   : > { %v410_v40 = vmax.f32 %v297_v24, %v334_v35  ;;  %v438_v41 = vmax.f32 %v406_v28, %v408_v31  ;;  %v411_v42 = vmax.f32 %v298_v32, %v333_v27  ;;  %v224_v43 = vsel %vm212_vm0, %v222_v33, %v223_v34 }
  0x1b   : > { %v439_v45 = vmax.f32 %v407_v36, %v409_v37  ;;  %v299_v46 = vmax.f32 %v154_v21, %v224_v43  ;;  %v336_v47 = vrot.slane %v155_v22, 2  ;;  %v300_v48 = vmax.f32 %v155_v22, %v223_v34  ;;  %v162_v21 = vld [vmem:[%s701_s13 + $0x70] sm:$0xff]  ;;  %v163_v22 = vld [vmem:[%s701_s13 + $0x78] sm:$0xff]  ;;  %v164_v43 = vld [vmem:[%s701_s13 + $0x80] sm:$0xff] }
  0x1c   : > { %v466_v50 = vmax.f32 %v438_v41, %v410_v40  ;;  %v440_v51 = vmax.f32 %v408_v31, %v410_v40  ;;  %v441_v52 = vmax.f32 %v409_v37, %v411_v42  ;;  %v225_v53 = vrot.slane %v156_v39, 1 }
  0x1d   : > { %v467_v54 = vmax.f32 %v439_v45, %v411_v42  ;;  %v337_v55 = vsel %vm325_vm1, %v335_v38, %v336_v47  ;;  %v413_v56 = vmax.f32 %v300_v48, %v336_v47  ;;  %v226_v57 = vrot.slane %v157_v44, 1 }
  0x1e   : > { %495 = vst.msk [vmem:[%s724_s17] sm:$0xff] %vm494_vm2, %v466_v50  ;;  %v412_v58 = vmax.f32 %v299_v46, %v337_v55  ;;  %v338_v59 = vrot.slane %v156_v39, 2  ;;  %v339_v60 = vrot.slane %v157_v44, 2  ;;  %v228_v62 = vrot.slane %v158_v49, 1 }
  0x1f   : > { %497 = vst.msk [vmem:[%s724_s17 + $0x8] sm:$0x3f] %vm496_vm3, %v467_v54  ;;  %v469_v63 = vmax.f32 %v441_v52, %v413_v56  ;;  %v227_v0 = vsel %vm212_vm0, %v225_v53, %v226_v57  ;;  %v302_v1 = vmax.f32 %v157_v44, %v226_v57  ;;  %v443_v2 = vmax.f32 %v411_v42, %v413_v56  ;;  %v165_v44 = vld [vmem:[%s701_s13 + $0x88] sm:$0xff]  ;;  %v167_v54 = vld [vmem:[%s701_s13 + $0x98] sm:$0xff] }
  0x20   : > { %v468_v5 = vmax.f32 %v440_v51, %v412_v58  ;;  %v301_v6 = vmax.f32 %v156_v39, %v227_v0  ;;  %v340_v7 = vsel %vm325_vm1, %v338_v59, %v339_v60  ;;  %v442_v8 = vmax.f32 %v410_v40, %v412_v58 }
  0x21   : > { %499 = vst.msk [vmem:[%s724_s17 + $0x18] sm:$0x3f] %vm496_vm3, %v469_v63  ;;  %v415_v9 = vmax.f32 %v302_v1, %v339_v60  ;;  %v229_v10 = vrot.slane %v159_v61, 1  ;;  %v341_v11 = vrot.slane %v158_v49, 2  ;;  %v342_v12 = vrot.slane %v159_v61, 2 }
  0x22   : > { %498 = vst.msk [vmem:[%s724_s17 + $0x10] sm:$0xff] %vm494_vm2, %v468_v5  ;;  %v414_v13 = vmax.f32 %v301_v6, %v340_v7  ;;  %v231_v14 = vrot.slane %v160_v3, 1  ;;  %v232_v15 = vrot.slane %v161_v4, 1  ;;  %v344_v16 = vrot.slane %v160_v3, 2  ;;  %v168_v7 = vld [vmem:[%s701_s13 + $0xa0] sm:$0xff] }
  0x23   : > { %v471_v17 = vmax.f32 %v443_v2, %v415_v9  ;;  %v230_v18 = vsel %vm212_vm0, %v228_v62, %v229_v10  ;;  %v343_v19 = vsel %vm325_vm1, %v341_v11, %v342_v12  ;;  %v304_v20 = vmax.f32 %v159_v61, %v229_v10 }
  0x24   : > { %v470_v23 = vmax.f32 %v442_v8, %v414_v13  ;;  %v303_v24 = vmax.f32 %v158_v49, %v230_v18  ;;  %v444_v25 = vmax.f32 %v412_v58, %v414_v13  ;;  %v445_v26 = vmax.f32 %v413_v56, %v415_v9  ;;  %v166_v49 = vld [vmem:[%s701_s13 + $0x90] sm:$0xff]  ;;  %v169_v8 = vld [vmem:[%s701_s13 + $0xa8] sm:$0xff] }
  0x25   : > { %501 = vst.msk [vmem:[%s724_s17 + $0x28] sm:$0x3f] %vm496_vm3, %v471_v17  ;;  %v417_v27 = vmax.f32 %v304_v20, %v342_v12  ;;  %v233_v28 = vsel %vm212_vm0, %v231_v14, %v232_v15  ;;  %v345_v29 = vrot.slane %v161_v4, 2  ;;  %v306_v30 = vmax.f32 %v161_v4, %v232_v15 }
  0x26   : > { %500 = vst.msk [vmem:[%s724_s17 + $0x20] sm:$0xff] %vm494_vm2, %v470_v23  ;;  %v416_v31 = vmax.f32 %v303_v24, %v343_v19  ;;  %v305_v32 = vmax.f32 %v160_v3, %v233_v28  ;;  %v234_v33 = vrot.slane %v162_v21, 1  ;;  %v235_v34 = vrot.slane %v163_v22, 1 }
  0x27   : > { %v473_v35 = vmax.f32 %v445_v26, %v417_v27  ;;  %v346_v36 = vsel %vm325_vm1, %v344_v16, %v345_v29  ;;  %v419_v37 = vmax.f32 %v306_v30, %v345_v29  ;;  %v447_v38 = vmax.f32 %v415_v9, %v417_v27  ;;  %v171_v30 = vld [vmem:[%s701_s13 + $0xb8] sm:$0xff] }
  0x28   : > { %v472_v39 = vmax.f32 %v444_v25, %v416_v31  ;;  %v418_v40 = vmax.f32 %v305_v32, %v346_v36  ;;  %v446_v41 = vmax.f32 %v414_v13, %v416_v31  ;;  %v236_v42 = vsel %vm212_vm0, %v234_v33, %v235_v34  ;;  %v170_v25 = vld [vmem:[%s701_s13 + $0xb0] sm:$0xff]  ;;  %v173_v36 = vld [vmem:[%s701_s13 + $0xc8] sm:$0xff] }
  0x29   : > { %503 = vst.msk [vmem:[%s724_s17 + $0x38] sm:$0x3f] %vm496_vm3, %v473_v35  ;;  %v475_v45 = vmax.f32 %v447_v38, %v419_v37  ;;  %v307_v46 = vmax.f32 %v162_v21, %v236_v42  ;;  %v347_v47 = vrot.slane %v162_v21, 2  ;;  %v348_v48 = vrot.slane %v163_v22, 2  ;;  %v172_v35 = vld [vmem:[%s701_s13 + $0xc0] sm:$0xff] }
  0x2a   : > { %502 = vst.msk [vmem:[%s724_s17 + $0x30] sm:$0xff] %vm494_vm2, %v472_v39  ;;  %v474_v50 = vmax.f32 %v446_v41, %v418_v40  ;;  %v448_v51 = vmax.f32 %v416_v31, %v418_v40  ;;  %v308_v52 = vmax.f32 %v163_v22, %v235_v34  ;;  %v449_v53 = vmax.f32 %v417_v27, %v419_v37 }
  0x2b   : > { %505 = vst.msk [vmem:[%s724_s17 + $0x48] sm:$0x3f] %vm496_vm3, %v475_v45  ;;  %v349_v55 = vsel %vm325_vm1, %v347_v47, %v348_v48  ;;  %v237_v56 = vrot.slane %v164_v43, 1  ;;  %v238_v57 = vrot.slane %v165_v44, 1  ;;  %v350_v58 = vrot.slane %v164_v43, 2 }
  0x2c   : > { %504 = vst.msk [vmem:[%s724_s17 + $0x40] sm:$0xff] %vm494_vm2, %v474_v50  ;;  %v420_v59 = vmax.f32 %v307_v46, %v349_v55  ;;  %v421_v60 = vmax.f32 %v308_v52, %v348_v48  ;;  %v351_v61 = vrot.slane %v165_v44, 2  ;;  %v240_v62 = vrot.slane %v166_v49, 1 }
  0x2d   : > { %v239_v63 = vsel %vm212_vm0, %v237_v56, %v238_v57  ;;  %v310_v0 = vmax.f32 %v165_v44, %v238_v57  ;;  %v241_v1 = vrot.slane %v167_v54, 1  ;;  %v353_v2 = vrot.slane %v166_v49, 2 }
  0x2e   : > { %v476_v3 = vmax.f32 %v448_v51, %v420_v59  ;;  %v477_v4 = vmax.f32 %v449_v53, %v421_v60  ;;  %v309_v5 = vmax.f32 %v164_v43, %v239_v63  ;;  %v352_v6 = vsel %vm325_vm1, %v350_v58, %v351_v61 }
  0x2f   : > { %v450_v9 = vmax.f32 %v418_v40, %v420_v59  ;;  %v423_v10 = vmax.f32 %v310_v0, %v351_v61  ;;  %v451_v11 = vmax.f32 %v419_v37, %v421_v60  ;;  %v242_v12 = vsel %vm212_vm0, %v240_v62, %v241_v1 }
  0x30   : > { %506 = vst.msk [vmem:[%s724_s17 + $0x50] sm:$0xff] %vm494_vm2, %v476_v3  ;;  %v422_v13 = vmax.f32 %v309_v5, %v352_v6  ;;  %v311_v14 = vmax.f32 %v166_v49, %v242_v12  ;;  %v354_v15 = vrot.slane %v167_v54, 2  ;;  %v312_v16 = vmax.f32 %v167_v54, %v241_v1  ;;  %v174_v49 = vld [vmem:[%s701_s13 + $0xd0] sm:$0xff]  ;;  %v175_v54 = vld [vmem:[%s701_s13 + $0xd8] sm:$0xff]  ;;  %v177_v12 = vld [vmem:[%s701_s13 + $0xe8] sm:$0xff] }
  0x31   : > { %507 = vst.msk [vmem:[%s724_s17 + $0x58] sm:$0x3f] %vm496_vm3, %v477_v4  ;;  %v479_v17 = vmax.f32 %v451_v11, %v423_v10  ;;  %v453_v18 = vmax.f32 %v421_v60, %v423_v10  ;;  %v243_v19 = vrot.slane %v168_v7, 1  ;;  %v244_v20 = vrot.slane %v169_v8, 1  ;;  %v176_v11 = vld [vmem:[%s701_s13 + $0xe0] sm:$0xff] }
  0x32   : > { %v478_v21 = vmax.f32 %v450_v9, %v422_v13  ;;  %v355_v22 = vsel %vm325_vm1, %v353_v2, %v354_v15  ;;  %v452_v23 = vmax.f32 %v420_v59, %v422_v13  ;;  %v425_v24 = vmax.f32 %v312_v16, %v354_v15 }
  0x33   : > { %509 = vst.msk [vmem:[%s724_s17 + $0x68] sm:$0x3f] %vm496_vm3, %v479_v17  ;;  %v424_v26 = vmax.f32 %v311_v14, %v355_v22  ;;  %v245_v27 = vsel %vm212_vm0, %v243_v19, %v244_v20  ;;  %v356_v28 = vrot.slane %v168_v7, 2  ;;  %v357_v29 = vrot.slane %v169_v8, 2  ;;  %v178_v17 = vld [vmem:[%s701_s13 + $0xf0] sm:$0xff] }
  0x34   : > { %508 = vst.msk [vmem:[%s724_s17 + $0x60] sm:$0xff] %vm494_vm2, %v478_v21  ;;  %v481_v31 = vmax.f32 %v453_v18, %v425_v24  ;;  %v313_v32 = vmax.f32 %v168_v7, %v245_v27  ;;  %v314_v33 = vmax.f32 %v169_v8, %v244_v20  ;;  %v455_v34 = vmax.f32 %v423_v10, %v425_v24 }
  0x35   : > { %v480_v37 = vmax.f32 %v452_v23, %v424_v26  ;;  %v358_v38 = vsel %vm325_vm1, %v356_v28, %v357_v29  ;;  %v454_v39 = vmax.f32 %v422_v13, %v424_v26  ;;  %v246_v40 = vrot.slane %v170_v25, 1 }
  0x36   : > { %511 = vst.msk [vmem:[%s724_s17 + $0x78] sm:$0x3f] %vm496_vm3, %v481_v31  ;;  %v426_v41 = vmax.f32 %v313_v32, %v358_v38  ;;  %v427_v42 = vmax.f32 %v314_v33, %v357_v29  ;;  %v247_v43 = vrot.slane %v171_v30, 1  ;;  %v359_v44 = vrot.slane %v170_v25, 2  ;;  %v179_v29 = vld [vmem:[%s701_s13 + $0xf8] sm:$0xff] }
  0x37   : > { %510 = vst.msk [vmem:[%s724_s17 + $0x70] sm:$0xff] %vm494_vm2, %v480_v37  ;;  %v360_v45 = vrot.slane %v171_v30, 2  ;;  %v249_v46 = vrot.slane %v172_v35, 1  ;;  %v250_v47 = vrot.slane %v173_v36, 1  ;;  %v362_v48 = vrot.slane %v172_v35, 2 }
  0x38   : > { %v482_v50 = vmax.f32 %v454_v39, %v426_v41  ;;  %v483_v51 = vmax.f32 %v455_v34, %v427_v42  ;;  %v248_v52 = vsel %vm212_vm0, %v246_v40, %v247_v43  ;;  %v456_v53 = vmax.f32 %v424_v26, %v426_v41 }
  0x39   : > { %v315_v55 = vmax.f32 %v170_v25, %v248_v52  ;;  %v361_v56 = vsel %vm325_vm1, %v359_v44, %v360_v45  ;;  %v316_v57 = vmax.f32 %v171_v30, %v247_v43  ;;  %v457_v58 = vmax.f32 %v425_v24, %v427_v42 }
  0x3a   : > { %512 = vst.msk [vmem:[%s724_s17 + $0x80] sm:$0xff] %vm494_vm2, %v482_v50  ;;  %v251_v59 = vsel %vm212_vm0, %v249_v46, %v250_v47  ;;  %v363_v60 = vrot.slane %v173_v36, 2  ;;  %v318_v61 = vmax.f32 %v173_v36, %v250_v47  ;;  %v252_v62 = vrot.slane %v174_v49, 1 }
  0x3b   : > { %513 = vst.msk [vmem:[%s724_s17 + $0x88] sm:$0x3f] %vm496_vm3, %v483_v51  ;;  %v428_v63 = vmax.f32 %v315_v55, %v361_v56  ;;  %v429_v0 = vmax.f32 %v316_v57, %v360_v45  ;;  %v317_v1 = vmax.f32 %v172_v35, %v251_v59  ;;  %v253_v2 = vrot.slane %v175_v54, 1 }
  0x3c   : > { %v364_v3 = vsel %vm325_vm1, %v362_v48, %v363_v60  ;;  %v431_v4 = vmax.f32 %v318_v61, %v363_v60  ;;  %v365_v5 = vrot.slane %v174_v49, 2  ;;  %v366_v6 = vrot.slane %v175_v54, 2 }
  0x3d   : > { %v484_v7 = vmax.f32 %v456_v53, %v428_v63  ;;  %v485_v8 = vmax.f32 %v457_v58, %v429_v0  ;;  %v430_v9 = vmax.f32 %v317_v1, %v364_v3  ;;  %v458_v10 = vmax.f32 %v426_v41, %v428_v63 }
  0x3e   : > { %v459_v13 = vmax.f32 %v427_v42, %v429_v0  ;;  %v254_v14 = vsel %vm212_vm0, %v252_v62, %v253_v2  ;;  %v367_v15 = vsel %vm325_vm1, %v365_v5, %v366_v6  ;;  %v320_v16 = vmax.f32 %v175_v54, %v253_v2 }
  0x3f   : > { %514 = vst.msk [vmem:[%s724_s17 + $0x90] sm:$0xff] %vm494_vm2, %v484_v7  ;;  %v486_v18 = vmax.f32 %v458_v10, %v430_v9  ;;  %v319_v19 = vmax.f32 %v174_v49, %v254_v14  ;;  %v460_v20 = vmax.f32 %v428_v63, %v430_v9  ;;  %v461_v21 = vmax.f32 %v429_v0, %v431_v4 }
  0x40   : > { %515 = vst.msk [vmem:[%s724_s17 + $0x98] sm:$0x3f] %vm496_vm3, %v485_v8  ;;  %v487_v22 = vmax.f32 %v459_v13, %v431_v4  ;;  %v433_v23 = vmax.f32 %v320_v16, %v366_v6  ;;  %v255_v24 = vrot.slane %v176_v11, 1  ;;  %v256_v25 = vrot.slane %v177_v12, 1 }
  0x41   : > { %516 = vst.msk [vmem:[%s724_s17 + $0xa0] sm:$0xff] %vm494_vm2, %v486_v18  ;;  %v432_v26 = vmax.f32 %v319_v19, %v367_v15  ;;  %v368_v27 = vrot.slane %v176_v11, 2  ;;  %v369_v28 = vrot.slane %v177_v12, 2  ;;  %v258_v30 = vrot.slane %v178_v17, 1 }
  0x42   : > { %517 = vst.msk [vmem:[%s724_s17 + $0xa8] sm:$0x3f] %vm496_vm3, %v487_v22  ;;  %v489_v31 = vmax.f32 %v461_v21, %v433_v23  ;;  %v257_v32 = vsel %vm212_vm0, %v255_v24, %v256_v25  ;;  %v322_v33 = vmax.f32 %v177_v12, %v256_v25  ;;  %v463_v34 = vmax.f32 %v431_v4, %v433_v23 }
  0x43   : > { %v488_v35 = vmax.f32 %v460_v20, %v432_v26  ;;  %v321_v36 = vmax.f32 %v176_v11, %v257_v32  ;;  %v370_v37 = vsel %vm325_vm1, %v368_v27, %v369_v28  ;;  %v462_v38 = vmax.f32 %v430_v9, %v432_v26 }
  0x44   : > { %519 = vst.msk [vmem:[%s724_s17 + $0xb8] sm:$0x3f] %vm496_vm3, %v489_v31  ;;  %v435_v39 = vmax.f32 %v322_v33, %v369_v28  ;;  %v259_v40 = vrot.slane %v179_v29, 1  ;;  %v371_v41 = vrot.slane %v178_v17, 2  ;;  %v372_v42 = vrot.slane %v179_v29, 2 }
  0x45   : > { %518 = vst.msk [vmem:[%s724_s17 + $0xb0] sm:$0xff] %vm494_vm2, %v488_v35  ;;  %v434_v43 = vmax.f32 %v321_v36, %v370_v37 }
  0x46   : > { %v491_v44 = vmax.f32 %v463_v34, %v435_v39  ;;  %v260_v45 = vsel %vm212_vm0, %v258_v30, %v259_v40  ;;  %v373_v46 = vsel %vm325_vm1, %v371_v41, %v372_v42  ;;  %v324_v47 = vmax.f32 %v179_v29, %v259_v40 }
  0x47   : > { %v490_v48 = vmax.f32 %v462_v38, %v434_v43  ;;  %v323_v49 = vmax.f32 %v178_v17, %v260_v45  ;;  %v464_v50 = vmax.f32 %v432_v26, %v434_v43  ;;  %v465_v51 = vmax.f32 %v433_v23, %v435_v39 }
  0x48   : > { %521 = vst.msk [vmem:[%s724_s17 + $0xc8] sm:$0x3f] %vm496_vm3, %v491_v44  ;;  %v437_v52 = vmax.f32 %v324_v47, %v372_v42 }
  0x49   : > { %520 = vst.msk [vmem:[%s724_s17 + $0xc0] sm:$0xff] %vm494_vm2, %v490_v48  ;;  %v436_v53 = vmax.f32 %v323_v49, %v373_v46 }
  0x4a   : > { %v493_v54 = vmax.f32 %v465_v51, %v437_v52 }
  0x4b   : > { %v492_v55 = vmax.f32 %v464_v50, %v436_v53 }
  0x4c   : > { %523 = vst.msk [vmem:[%s724_s17 + $0xd8] sm:$0x3f] %vm496_vm3, %v493_v54 }
  0x4d   : > { %522 = vst.msk [vmem:[%s724_s17 + $0xd0] sm:$0xff] %vm494_vm2, %v492_v55 }
  0x4e PF: > { %s11_s8 = sadd.s32 1, %s665_s8   ;;  %s840_s6 = smov %s661_s7 }
  0x4f   : > { %p8_p5 = scmp.ge.s32.totalorder %s11_s8, 4   ;;  %s841_s7 = smov %s843_s9 }
  0x51   :  { %10 = sbr.rel (!%p8_p5) target bundleno = 2 (0x2), region = 54 }

// kernel: reduction_b_forward.9
= control target key start
LH: loop header
LB: loop body
LE: loop exit
PB: predicated region body
PF: predicated region fallthrough
CT: control target
= control target key end

     0   :  { %s2255_s1 = inlined_call_operand.vmem [shape: bf16[128,128], index: 1, kind: input, shape index: {}]   ;;  %s2256_s0 = inlined_call_operand.vmem [shape: bf16[512,128], index: 0, kind: input, shape index: {}]   ;;  %s2257_s2 = inlined_call_operand.vmem [shape: f32[1,128], index: 2, kind: input, shape index: {}]   ;;  %s2258_s3 = inlined_call_operand.vmem [shape: bf16[512,128], index: 3, kind: output, shape index: {}]  }
   0x1   :  { %v1910_v0 = vld [vmem:[%s2255_s1] sm:$0xff]   ;;  %v1911_v1 = vld [vmem:[%s2255_s1 + $0x8] sm:$0xff]   ;;  %v1912_v2 = vld [vmem:[%s2255_s1 + $0x10] sm:$0xff]  }
   0x2   :  { %1814 = vmatprep.subr.bf16.mxu0 %v1910_v0  ;;  %1894 = vmatprep.subr.bf16.mxu1 %v1910_v0  ;;  %v1913_v3 = vld [vmem:[%s2255_s1 + $0x18] sm:$0xff]   ;;  %v1918_v4 = vld [vmem:[%s2256_s0] sm:$0xff]   ;;  %v1915_v7 = vld [vmem:[%s2255_s1 + $0x28] sm:$0xff]  }
   0x3   :  { %1815 = vmatpush3.bf16.msra.mxu0 %v1910_v0  ;;  %1902 = vmatpush3.bf16.msra.mxu1 %v1910_v0  ;;  %v1919_v5 = vld [vmem:[%s2256_s0 + $0x80] sm:$0xff]   ;;  %v1916_v8 = vld [vmem:[%s2255_s1 + $0x30] sm:$0xff]   ;;  %v1917_v9 = vld [vmem:[%s2255_s1 + $0x38] sm:$0xff]  }
   0x4   :  { %1816 = vmatprep.subr.bf16.mxu0 %v1911_v1  ;;  %1895 = vmatprep.subr.bf16.mxu1 %v1911_v1  ;;  %v1914_v6 = vld [vmem:[%s2255_s1 + $0x20] sm:$0xff]   ;;  %v1920_v10 = vld [vmem:[%s2256_s0 + $0x8] sm:$0xff]   ;;  %v1922_v12 = vld [vmem:[%s2256_s0 + $0x10] sm:$0xff]  }
   0x5   :  { %1830 = vmatprep.mubr.bf16.mxu0 %v1918_v4  ;;  %1862 = vmatprep.mubr.bf16.mxu1 %v1919_v5  ;;  %v1921_v11 = vld [vmem:[%s2256_s0 + $0x88] sm:$0xff]   ;;  %v1923_v13 = vld [vmem:[%s2256_s0 + $0x90] sm:$0xff]   ;;  %v1924_v14 = vld [vmem:[%s2256_s0 + $0x18] sm:$0xff]  }
   0x6   :  { %v1925_v15 = vld [vmem:[%s2256_s0 + $0x98] sm:$0xff]   ;;  %v1926_v16 = vld [vmem:[%s2256_s0 + $0x20] sm:$0xff]   ;;  %v1928_v18 = vld [vmem:[%s2256_s0 + $0x28] sm:$0xff]  }
   0x7   :  { %1817 = vmatpush3.bf16.msra.mxu0 %v1911_v1  ;;  %1903 = vmatpush3.bf16.msra.mxu1 %v1911_v1  ;;  %v1927_v17 = vld [vmem:[%s2256_s0 + $0xa0] sm:$0xff]   ;;  %v1929_v19 = vld [vmem:[%s2256_s0 + $0xa8] sm:$0xff]   ;;  %v1930_v20 = vld [vmem:[%s2256_s0 + $0x30] sm:$0xff]  }
   0x8   :  { %1818 = vmatprep.subr.bf16.mxu0 %v1912_v2  ;;  %1896 = vmatprep.subr.bf16.mxu1 %v1912_v2  ;;  %v1931_v21 = vld [vmem:[%s2256_s0 + $0xb0] sm:$0xff]   ;;  %v1932_v22 = vld [vmem:[%s2256_s0 + $0x38] sm:$0xff]   ;;  %v1934_v24 = vld [vmem:[%s2256_s0 + $0x40] sm:$0xff]  }
   0x9   :  { %v1933_v23 = vld [vmem:[%s2256_s0 + $0xb8] sm:$0xff]   ;;  %v1935_v25 = vld [vmem:[%s2256_s0 + $0xc0] sm:$0xff]   ;;  %v1936_v26 = vld [vmem:[%s2256_s0 + $0x48] sm:$0xff]  }
   0xa   :  { %v1937_v27 = vld [vmem:[%s2256_s0 + $0xc8] sm:$0xff]   ;;  %v1938_v28 = vld [vmem:[%s2256_s0 + $0x50] sm:$0xff]   ;;  %v1940_v30 = vld [vmem:[%s2256_s0 + $0x58] sm:$0xff]  }
   0xb   :  { %1819 = vmatpush3.bf16.msra.mxu0 %v1912_v2  ;;  %1904 = vmatpush3.bf16.msra.mxu1 %v1912_v2  ;;  %v1939_v29 = vld [vmem:[%s2256_s0 + $0xd0] sm:$0xff]   ;;  %v1941_v31 = vld [vmem:[%s2256_s0 + $0xd8] sm:$0xff]   ;;  %v1942_v32 = vld [vmem:[%s2256_s0 + $0x60] sm:$0xff]  }
   0xc   :  { %1820 = vmatprep.subr.bf16.mxu0 %v1913_v3  ;;  %1897 = vmatprep.subr.bf16.mxu1 %v1913_v3  ;;  %v1943_v33 = vld [vmem:[%s2256_s0 + $0xe0] sm:$0xff]   ;;  %v1944_v34 = vld [vmem:[%s2256_s0 + $0x68] sm:$0xff]   ;;  %v1946_v36 = vld [vmem:[%s2256_s0 + $0x70] sm:$0xff]  }
   0xd   :  { %v1945_v35 = vld [vmem:[%s2256_s0 + $0xe8] sm:$0xff]   ;;  %v1947_v37 = vld [vmem:[%s2256_s0 + $0xf0] sm:$0xff]   ;;  %v1948_v38 = vld [vmem:[%s2256_s0 + $0x78] sm:$0xff]  }
   0xe   :  { %v1949_v39 = vld [vmem:[%s2256_s0 + $0xf8] sm:$0xff]   ;;  %v2093_v40 = vld [vmem:[%s2257_s2] ss:$0 sm:$0xff] }
   0xf   :  { %1821 = vmatpush3.bf16.msra.mxu0 %v1913_v3  ;;  %1905 = vmatpush3.bf16.msra.mxu1 %v1913_v3 }
  0x10   :  { %1822 = vmatprep.subr.bf16.mxu0 %v1914_v6  ;;  %1898 = vmatprep.subr.bf16.mxu1 %v1914_v6 }
  0x13   :  { %1823 = vmatpush3.bf16.msra.mxu0 %v1914_v6  ;;  %1906 = vmatpush3.bf16.msra.mxu1 %v1914_v6 }
  0x14   :  { %1824 = vmatprep.subr.bf16.mxu0 %v1915_v7  ;;  %1899 = vmatprep.subr.bf16.mxu1 %v1915_v7 }
  0x17   :  { %1825 = vmatpush3.bf16.msra.mxu0 %v1915_v7  ;;  %1907 = vmatpush3.bf16.msra.mxu1 %v1915_v7 }
  0x18   :  { %1826 = vmatprep.subr.bf16.mxu0 %v1916_v8  ;;  %1900 = vmatprep.subr.bf16.mxu1 %v1916_v8 }
  0x1b   :  { %1827 = vmatpush3.bf16.msra.mxu0 %v1916_v8  ;;  %1908 = vmatpush3.bf16.msra.mxu1 %v1916_v8 }
  0x1c   :  { %1828 = vmatprep.subr.bf16.mxu0 %v1917_v9  ;;  %1901 = vmatprep.subr.bf16.mxu1 %v1917_v9 }
  0x1f   :  { %1829 = vmatpush3.bf16.msra.mxu0 %v1917_v9  ;;  %1909 = vmatpush3.bf16.msra.mxu1 %v1917_v9 }
  0x22   :  { %1831 = vmatmul.mubr.bf16.vlgmr.msra.gmra.mrb[0].mxu0 %v1920_v10  ;;  %1863 = vmatmul.mubr.bf16.vlgmr.msra.gmra.mrb[0].mxu1 %v1921_v11 }
  0x23   :  { %1834 = vmatprep.mubr.bf16.mxu0 %v1922_v12  ;;  %1866 = vmatprep.mubr.bf16.mxu1 %v1923_v13 }
  0x2a   :  { %1835 = vmatmul.mubr.bf16.gmra.mrb[4].mxu0 %v1924_v14  ;;  %1867 = vmatmul.mubr.bf16.gmra.mrb[4].mxu1 %v1925_v15 }
  0x2b   :  { %1838 = vmatprep.mubr.bf16.mxu0 %v1926_v16  ;;  %1870 = vmatprep.mubr.bf16.mxu1 %v1927_v17 }
  0x32   :  { %1839 = vmatmul.mubr.bf16.gmra.mrb[8].mxu0 %v1928_v18  ;;  %1871 = vmatmul.mubr.bf16.gmra.mrb[8].mxu1 %v1929_v19 }
  0x33   :  { %1842 = vmatprep.mubr.bf16.mxu0 %v1930_v20  ;;  %1874 = vmatprep.mubr.bf16.mxu1 %v1931_v21 }
  0x3a   :  { %1843 = vmatmul.mubr.bf16.gmra.mrb[12].mxu0 %v1932_v22  ;;  %1875 = vmatmul.mubr.bf16.gmra.mrb[12].mxu1 %v1933_v23 }
  0x3b   :  { %1846 = vmatprep.mubr.bf16.mxu0 %v1934_v24  ;;  %1878 = vmatprep.mubr.bf16.mxu1 %v1935_v25 }
  0x42   :  { %1847 = vmatmul.mubr.bf16.gmra.mrb[16].mxu0 %v1936_v26  ;;  %1879 = vmatmul.mubr.bf16.gmra.mrb[16].mxu1 %v1937_v27 }
  0x43   :  { %1850 = vmatprep.mubr.bf16.mxu0 %v1938_v28  ;;  %1882 = vmatprep.mubr.bf16.mxu1 %v1939_v29 }
  0x4a   :  { %1851 = vmatmul.mubr.bf16.gmra.mrb[20].mxu0 %v1940_v30  ;;  %1883 = vmatmul.mubr.bf16.gmra.mrb[20].mxu1 %v1941_v31 }
  0x4b   :  { %1854 = vmatprep.mubr.bf16.mxu0 %v1942_v32  ;;  %1886 = vmatprep.mubr.bf16.mxu1 %v1943_v33 }
  0x52   :  { %1855 = vmatmul.mubr.bf16.gmra.mrb[24].mxu0 %v1944_v34  ;;  %1887 = vmatmul.mubr.bf16.gmra.mrb[24].mxu1 %v1945_v35 }
  0x53   :  { %1858 = vmatprep.mubr.bf16.mxu0 %v1946_v36  ;;  %1890 = vmatprep.mubr.bf16.mxu1 %v1947_v37 }
  0x5a   :  { %1859 = vmatmul.mubr.bf16.gmra.mrb[28].mxu0 %v1948_v38  ;;  %1891 = vmatmul.mubr.bf16.gmra.mrb[28].mxu1 %v1949_v39 }
  0xf5   :  { %v1832_v41 = vpop.f32.mrb[0].mxu0  ;;  %v1864_v42 = vpop.f32.mrb[0].mxu1 }
  0xf6   :  { %v964_v43 = vadd.f32 %v1832_v41, %v2093_v40  ;;  %v996_v44 = vadd.f32 %v1864_v42, %v2093_v40  ;;  %v369_v45 = vpop.f32.mrb[1].mxu0  ;;  %v497_v46 = vpop.f32.mrb[1].mxu1 }
  0xf7   :  { %v962_v47 = vadd.f32 %v2093_v40, %v369_v45  ;;  %v994_v48 = vadd.f32 %v2093_v40, %v497_v46  ;;  %v1833_v49 = vpop.f32.mrb[2].mxu0  ;;  %v1865_v50 = vpop.f32.mrb[2].mxu1 }
  0xf8   :  { %v965_v51 = vadd.f32 %v1833_v49, %v2093_v40  ;;  %v997_v52 = vadd.f32 %v1865_v50, %v2093_v40  ;;  %v372_v53 = vpop.f32.mrb[3].mxu0  ;;  %v500_v54 = vpop.f32.mrb[3].mxu1  ;;  %v1028_v57 = vmax.f32 %v964_v43, 0.0  ;;  %v1060_v58 = vmax.f32 %v996_v44, 0.0 }
  0xf9   :  { %v963_v55 = vadd.f32 %v2093_v40, %v372_v53  ;;  %v995_v56 = vadd.f32 %v2093_v40, %v500_v54  ;;  %v1026_v61 = vmax.f32 %v962_v47, 0.0  ;;  %v1058_v62 = vmax.f32 %v994_v48, 0.0 }
  0xfa   :  { %v1029_v59 = vmax.f32 %v965_v51, 0.0  ;;  %v1061_v60 = vmax.f32 %v997_v52, 0.0 }
  0xfb   :  { %v1027_v63 = vmax.f32 %v963_v55, 0.0  ;;  %v1059_v0 = vmax.f32 %v995_v56, 0.0 }
  0xfc   :  { %v1591_v1 = vpack.c.bf16 %v1029_v59, %v1028_v57  ;;  %v1671_v2 = vpack.c.bf16 %v1061_v60, %v1060_v58 }
  0xfd   :  { %v1586_v3 = vpack.c.bf16 %v1027_v63, %v1026_v61  ;;  %v1666_v4 = vpack.c.bf16 %v1059_v0, %v1058_v62  ;;  %v1836_v5 = vpop.f32.mrb[4].mxu0  ;;  %v1868_v6 = vpop.f32.mrb[4].mxu1 }
  0xfe   :  { %1743 = vst [vmem:[%s2258_s3 + $0x8] sm:$0xff] %v1591_v1   ;;  %1759 = vst [vmem:[%s2258_s3 + $0x88] sm:$0xff] %v1671_v2   ;;  %v968_v7 = vadd.f32 %v1836_v5, %v2093_v40  ;;  %v1000_v8 = vadd.f32 %v1868_v6, %v2093_v40  ;;  %v385_v9 = vpop.f32.mrb[5].mxu0  ;;  %v513_v10 = vpop.f32.mrb[5].mxu1 }
  0xff   :  { %1587 = vst [vmem:[%s2258_s3] sm:$0xff] %v1586_v3   ;;  %1758 = vst [vmem:[%s2258_s3 + $0x80] sm:$0xff] %v1666_v4   ;;  %v966_v11 = vadd.f32 %v2093_v40, %v385_v9  ;;  %v998_v12 = vadd.f32 %v2093_v40, %v513_v10  ;;  %v1837_v13 = vpop.f32.mrb[6].mxu0  ;;  %v1869_v14 = vpop.f32.mrb[6].mxu1 }
 0x100   :  { %v969_v15 = vadd.f32 %v1837_v13, %v2093_v40  ;;  %v1001_v16 = vadd.f32 %v1869_v14, %v2093_v40  ;;  %v388_v17 = vpop.f32.mrb[7].mxu0  ;;  %v516_v18 = vpop.f32.mrb[7].mxu1  ;;  %v1032_v21 = vmax.f32 %v968_v7, 0.0  ;;  %v1064_v22 = vmax.f32 %v1000_v8, 0.0 }
 0x101   :  { %v967_v19 = vadd.f32 %v2093_v40, %v388_v17  ;;  %v999_v20 = vadd.f32 %v2093_v40, %v516_v18  ;;  %v1030_v25 = vmax.f32 %v966_v11, 0.0  ;;  %v1062_v26 = vmax.f32 %v998_v12, 0.0 }
 0x102   :  { %v1033_v23 = vmax.f32 %v969_v15, 0.0  ;;  %v1065_v24 = vmax.f32 %v1001_v16, 0.0 }
 0x103   :  { %v1031_v27 = vmax.f32 %v967_v19, 0.0  ;;  %v1063_v28 = vmax.f32 %v999_v20, 0.0 }
 0x104   :  { %v1601_v29 = vpack.c.bf16 %v1033_v23, %v1032_v21  ;;  %v1681_v30 = vpack.c.bf16 %v1065_v24, %v1064_v22 }
 0x105   :  { %v1596_v31 = vpack.c.bf16 %v1031_v27, %v1030_v25  ;;  %v1676_v32 = vpack.c.bf16 %v1063_v28, %v1062_v26  ;;  %v1840_v33 = vpop.f32.mrb[8].mxu0  ;;  %v1872_v34 = vpop.f32.mrb[8].mxu1 }
 0x106   :  { %1745 = vst [vmem:[%s2258_s3 + $0x18] sm:$0xff] %v1601_v29   ;;  %1761 = vst [vmem:[%s2258_s3 + $0x98] sm:$0xff] %v1681_v30   ;;  %v972_v35 = vadd.f32 %v1840_v33, %v2093_v40  ;;  %v1004_v36 = vadd.f32 %v1872_v34, %v2093_v40  ;;  %v401_v37 = vpop.f32.mrb[9].mxu0  ;;  %v529_v38 = vpop.f32.mrb[9].mxu1 }
 0x107   :  { %1744 = vst [vmem:[%s2258_s3 + $0x10] sm:$0xff] %v1596_v31   ;;  %1760 = vst [vmem:[%s2258_s3 + $0x90] sm:$0xff] %v1676_v32   ;;  %v970_v39 = vadd.f32 %v2093_v40, %v401_v37  ;;  %v1002_v41 = vadd.f32 %v2093_v40, %v529_v38  ;;  %v1841_v42 = vpop.f32.mrb[10].mxu0  ;;  %v1873_v43 = vpop.f32.mrb[10].mxu1 }
 0x108   :  { %v973_v44 = vadd.f32 %v1841_v42, %v2093_v40  ;;  %v1005_v45 = vadd.f32 %v1873_v43, %v2093_v40  ;;  %v404_v46 = vpop.f32.mrb[11].mxu0  ;;  %v532_v47 = vpop.f32.mrb[11].mxu1  ;;  %v1036_v50 = vmax.f32 %v972_v35, 0.0  ;;  %v1068_v51 = vmax.f32 %v1004_v36, 0.0 }
 0x109   :  { %v971_v48 = vadd.f32 %v2093_v40, %v404_v46  ;;  %v1003_v49 = vadd.f32 %v2093_v40, %v532_v47  ;;  %v1034_v54 = vmax.f32 %v970_v39, 0.0  ;;  %v1066_v55 = vmax.f32 %v1002_v41, 0.0 }
 0x10a   :  { %v1037_v52 = vmax.f32 %v973_v44, 0.0  ;;  %v1069_v53 = vmax.f32 %v1005_v45, 0.0 }
 0x10b   :  { %v1035_v56 = vmax.f32 %v971_v48, 0.0  ;;  %v1067_v57 = vmax.f32 %v1003_v49, 0.0 }
 0x10c   :  { %v1611_v58 = vpack.c.bf16 %v1037_v52, %v1036_v50  ;;  %v1691_v59 = vpack.c.bf16 %v1069_v53, %v1068_v51 }
 0x10d   :  { %v1606_v60 = vpack.c.bf16 %v1035_v56, %v1034_v54  ;;  %v1686_v61 = vpack.c.bf16 %v1067_v57, %v1066_v55  ;;  %v1844_v62 = vpop.f32.mrb[12].mxu0  ;;  %v1876_v63 = vpop.f32.mrb[12].mxu1 }
 0x10e   :  { %1747 = vst [vmem:[%s2258_s3 + $0x28] sm:$0xff] %v1611_v58   ;;  %1763 = vst [vmem:[%s2258_s3 + $0xa8] sm:$0xff] %v1691_v59   ;;  %v976_v0 = vadd.f32 %v1844_v62, %v2093_v40  ;;  %v1008_v1 = vadd.f32 %v1876_v63, %v2093_v40  ;;  %v417_v2 = vpop.f32.mrb[13].mxu0  ;;  %v545_v3 = vpop.f32.mrb[13].mxu1 }
 0x10f   :  { %1746 = vst [vmem:[%s2258_s3 + $0x20] sm:$0xff] %v1606_v60   ;;  %1762 = vst [vmem:[%s2258_s3 + $0xa0] sm:$0xff] %v1686_v61   ;;  %v974_v4 = vadd.f32 %v2093_v40, %v417_v2  ;;  %v1006_v5 = vadd.f32 %v2093_v40, %v545_v3  ;;  %v1845_v6 = vpop.f32.mrb[14].mxu0  ;;  %v1877_v7 = vpop.f32.mrb[14].mxu1 }
 0x110   :  { %v977_v8 = vadd.f32 %v1845_v6, %v2093_v40  ;;  %v1009_v9 = vadd.f32 %v1877_v7, %v2093_v40  ;;  %v420_v10 = vpop.f32.mrb[15].mxu0  ;;  %v548_v11 = vpop.f32.mrb[15].mxu1  ;;  %v1040_v14 = vmax.f32 %v976_v0, 0.0  ;;  %v1072_v15 = vmax.f32 %v1008_v1, 0.0 }
 0x111   :  { %v975_v12 = vadd.f32 %v2093_v40, %v420_v10  ;;  %v1007_v13 = vadd.f32 %v2093_v40, %v548_v11  ;;  %v1038_v18 = vmax.f32 %v974_v4, 0.0  ;;  %v1070_v19 = vmax.f32 %v1006_v5, 0.0 }
 0x112   :  { %v1041_v16 = vmax.f32 %v977_v8, 0.0  ;;  %v1073_v17 = vmax.f32 %v1009_v9, 0.0 }
 0x113   :  { %v1039_v20 = vmax.f32 %v975_v12, 0.0  ;;  %v1071_v21 = vmax.f32 %v1007_v13, 0.0 }
 0x114   :  { %v1621_v22 = vpack.c.bf16 %v1041_v16, %v1040_v14  ;;  %v1701_v23 = vpack.c.bf16 %v1073_v17, %v1072_v15 }
 0x115   :  { %v1616_v24 = vpack.c.bf16 %v1039_v20, %v1038_v18  ;;  %v1696_v25 = vpack.c.bf16 %v1071_v21, %v1070_v19  ;;  %v1848_v26 = vpop.f32.mrb[16].mxu0  ;;  %v1880_v27 = vpop.f32.mrb[16].mxu1 }
 0x116   :  { %1749 = vst [vmem:[%s2258_s3 + $0x38] sm:$0xff] %v1621_v22   ;;  %1765 = vst [vmem:[%s2258_s3 + $0xb8] sm:$0xff] %v1701_v23   ;;  %v980_v28 = vadd.f32 %v1848_v26, %v2093_v40  ;;  %v1012_v29 = vadd.f32 %v1880_v27, %v2093_v40  ;;  %v433_v30 = vpop.f32.mrb[17].mxu0  ;;  %v561_v31 = vpop.f32.mrb[17].mxu1 }
 0x117   :  { %1748 = vst [vmem:[%s2258_s3 + $0x30] sm:$0xff] %v1616_v24   ;;  %1764 = vst [vmem:[%s2258_s3 + $0xb0] sm:$0xff] %v1696_v25   ;;  %v978_v32 = vadd.f32 %v2093_v40, %v433_v30  ;;  %v1010_v33 = vadd.f32 %v2093_v40, %v561_v31  ;;  %v1849_v34 = vpop.f32.mrb[18].mxu0  ;;  %v1881_v35 = vpop.f32.mrb[18].mxu1 }
 0x118   :  { %v981_v36 = vadd.f32 %v1849_v34, %v2093_v40  ;;  %v1013_v37 = vadd.f32 %v1881_v35, %v2093_v40  ;;  %v436_v38 = vpop.f32.mrb[19].mxu0  ;;  %v564_v39 = vpop.f32.mrb[19].mxu1  ;;  %v1044_v43 = vmax.f32 %v980_v28, 0.0  ;;  %v1076_v44 = vmax.f32 %v1012_v29, 0.0 }
 0x119   :  { %v979_v41 = vadd.f32 %v2093_v40, %v436_v38  ;;  %v1011_v42 = vadd.f32 %v2093_v40, %v564_v39  ;;  %v1042_v47 = vmax.f32 %v978_v32, 0.0  ;;  %v1074_v48 = vmax.f32 %v1010_v33, 0.0 }
 0x11a   :  { %v1045_v45 = vmax.f32 %v981_v36, 0.0  ;;  %v1077_v46 = vmax.f32 %v1013_v37, 0.0 }
 0x11b   :  { %v1043_v49 = vmax.f32 %v979_v41, 0.0  ;;  %v1075_v50 = vmax.f32 %v1011_v42, 0.0 }
 0x11c   :  { %v1631_v51 = vpack.c.bf16 %v1045_v45, %v1044_v43  ;;  %v1711_v52 = vpack.c.bf16 %v1077_v46, %v1076_v44 }
 0x11d   :  { %v1626_v53 = vpack.c.bf16 %v1043_v49, %v1042_v47  ;;  %v1706_v54 = vpack.c.bf16 %v1075_v50, %v1074_v48  ;;  %v1852_v55 = vpop.f32.mrb[20].mxu0  ;;  %v1884_v56 = vpop.f32.mrb[20].mxu1 }
 0x11e   :  { %1751 = vst [vmem:[%s2258_s3 + $0x48] sm:$0xff] %v1631_v51   ;;  %1767 = vst [vmem:[%s2258_s3 + $0xc8] sm:$0xff] %v1711_v52   ;;  %v984_v57 = vadd.f32 %v1852_v55, %v2093_v40  ;;  %v1016_v58 = vadd.f32 %v1884_v56, %v2093_v40  ;;  %v449_v59 = vpop.f32.mrb[21].mxu0  ;;  %v577_v60 = vpop.f32.mrb[21].mxu1 }
 0x11f   :  { %1750 = vst [vmem:[%s2258_s3 + $0x40] sm:$0xff] %v1626_v53   ;;  %1766 = vst [vmem:[%s2258_s3 + $0xc0] sm:$0xff] %v1706_v54   ;;  %v982_v61 = vadd.f32 %v2093_v40, %v449_v59  ;;  %v1014_v62 = vadd.f32 %v2093_v40, %v577_v60  ;;  %v1853_v63 = vpop.f32.mrb[22].mxu0  ;;  %v1885_v0 = vpop.f32.mrb[22].mxu1 }
 0x120   :  { %v985_v1 = vadd.f32 %v1853_v63, %v2093_v40  ;;  %v1017_v2 = vadd.f32 %v1885_v0, %v2093_v40  ;;  %v452_v3 = vpop.f32.mrb[23].mxu0  ;;  %v580_v4 = vpop.f32.mrb[23].mxu1  ;;  %v1048_v7 = vmax.f32 %v984_v57, 0.0  ;;  %v1080_v8 = vmax.f32 %v1016_v58, 0.0 }
 0x121   :  { %v983_v5 = vadd.f32 %v2093_v40, %v452_v3  ;;  %v1015_v6 = vadd.f32 %v2093_v40, %v580_v4  ;;  %v1046_v11 = vmax.f32 %v982_v61, 0.0  ;;  %v1078_v12 = vmax.f32 %v1014_v62, 0.0 }
 0x122   :  { %v1049_v9 = vmax.f32 %v985_v1, 0.0  ;;  %v1081_v10 = vmax.f32 %v1017_v2, 0.0 }
 0x123   :  { %v1047_v13 = vmax.f32 %v983_v5, 0.0  ;;  %v1079_v14 = vmax.f32 %v1015_v6, 0.0 }
 0x124   :  { %v1641_v15 = vpack.c.bf16 %v1049_v9, %v1048_v7  ;;  %v1721_v16 = vpack.c.bf16 %v1081_v10, %v1080_v8 }
 0x125   :  { %v1636_v17 = vpack.c.bf16 %v1047_v13, %v1046_v11  ;;  %v1716_v18 = vpack.c.bf16 %v1079_v14, %v1078_v12  ;;  %v1856_v19 = vpop.f32.mrb[24].mxu0  ;;  %v1888_v20 = vpop.f32.mrb[24].mxu1 }
 0x126   :  { %1753 = vst [vmem:[%s2258_s3 + $0x58] sm:$0xff] %v1641_v15   ;;  %1769 = vst [vmem:[%s2258_s3 + $0xd8] sm:$0xff] %v1721_v16   ;;  %v988_v21 = vadd.f32 %v1856_v19, %v2093_v40  ;;  %v1020_v22 = vadd.f32 %v1888_v20, %v2093_v40  ;;  %v465_v23 = vpop.f32.mrb[25].mxu0  ;;  %v593_v24 = vpop.f32.mrb[25].mxu1 }
 0x127   :  { %1752 = vst [vmem:[%s2258_s3 + $0x50] sm:$0xff] %v1636_v17   ;;  %1768 = vst [vmem:[%s2258_s3 + $0xd0] sm:$0xff] %v1716_v18   ;;  %v986_v25 = vadd.f32 %v2093_v40, %v465_v23  ;;  %v1018_v26 = vadd.f32 %v2093_v40, %v593_v24  ;;  %v1857_v27 = vpop.f32.mrb[26].mxu0  ;;  %v1889_v28 = vpop.f32.mrb[26].mxu1 }
 0x128   :  { %v989_v29 = vadd.f32 %v1857_v27, %v2093_v40  ;;  %v1021_v30 = vadd.f32 %v1889_v28, %v2093_v40  ;;  %v468_v31 = vpop.f32.mrb[27].mxu0  ;;  %v596_v32 = vpop.f32.mrb[27].mxu1  ;;  %v1052_v35 = vmax.f32 %v988_v21, 0.0  ;;  %v1084_v36 = vmax.f32 %v1020_v22, 0.0 }
 0x129   :  { %v987_v33 = vadd.f32 %v2093_v40, %v468_v31  ;;  %v1019_v34 = vadd.f32 %v2093_v40, %v596_v32  ;;  %v1050_v39 = vmax.f32 %v986_v25, 0.0  ;;  %v1082_v41 = vmax.f32 %v1018_v26, 0.0 }
 0x12a   :  { %v1053_v37 = vmax.f32 %v989_v29, 0.0  ;;  %v1085_v38 = vmax.f32 %v1021_v30, 0.0 }
 0x12b   :  { %v1051_v42 = vmax.f32 %v987_v33, 0.0  ;;  %v1083_v43 = vmax.f32 %v1019_v34, 0.0 }
 0x12c   :  { %v1651_v44 = vpack.c.bf16 %v1053_v37, %v1052_v35  ;;  %v1731_v45 = vpack.c.bf16 %v1085_v38, %v1084_v36 }
 0x12d   :  { %v1646_v46 = vpack.c.bf16 %v1051_v42, %v1050_v39  ;;  %v1726_v47 = vpack.c.bf16 %v1083_v43, %v1082_v41  ;;  %v1860_v48 = vpop.f32.mrb[28].mxu0  ;;  %v1892_v49 = vpop.f32.mrb[28].mxu1 }
 0x12e   :  { %1755 = vst [vmem:[%s2258_s3 + $0x68] sm:$0xff] %v1651_v44   ;;  %1771 = vst [vmem:[%s2258_s3 + $0xe8] sm:$0xff] %v1731_v45   ;;  %v992_v50 = vadd.f32 %v1860_v48, %v2093_v40  ;;  %v1024_v51 = vadd.f32 %v1892_v49, %v2093_v40  ;;  %v481_v52 = vpop.f32.mrb[29].mxu0  ;;  %v609_v53 = vpop.f32.mrb[29].mxu1 }
 0x12f   :  { %1754 = vst [vmem:[%s2258_s3 + $0x60] sm:$0xff] %v1646_v46   ;;  %1770 = vst [vmem:[%s2258_s3 + $0xe0] sm:$0xff] %v1726_v47   ;;  %v990_v54 = vadd.f32 %v2093_v40, %v481_v52  ;;  %v1022_v55 = vadd.f32 %v2093_v40, %v609_v53  ;;  %v1861_v56 = vpop.f32.mrb[30].mxu0  ;;  %v1893_v57 = vpop.f32.mrb[30].mxu1 }
 0x130   :  { %v993_v58 = vadd.f32 %v1861_v56, %v2093_v40  ;;  %v1025_v59 = vadd.f32 %v1893_v57, %v2093_v40  ;;  %v484_v60 = vpop.f32.mrb[31].mxu0  ;;  %v612_v61 = vpop.f32.mrb[31].mxu1  ;;  %v1056_v0 = vmax.f32 %v992_v50, 0.0  ;;  %v1088_v1 = vmax.f32 %v1024_v51, 0.0 }
 0x131   :  { %v991_v62 = vadd.f32 %v2093_v40, %v484_v60  ;;  %v1023_v63 = vadd.f32 %v2093_v40, %v612_v61  ;;  %v1054_v4 = vmax.f32 %v990_v54, 0.0  ;;  %v1086_v5 = vmax.f32 %v1022_v55, 0.0 }
 0x132   :  { %v1057_v2 = vmax.f32 %v993_v58, 0.0  ;;  %v1089_v3 = vmax.f32 %v1025_v59, 0.0 }
 0x133   :  { %v1055_v6 = vmax.f32 %v991_v62, 0.0  ;;  %v1087_v7 = vmax.f32 %v1023_v63, 0.0 }
 0x134   :  { %v1661_v8 = vpack.c.bf16 %v1057_v2, %v1056_v0  ;;  %v1741_v9 = vpack.c.bf16 %v1089_v3, %v1088_v1 }
 0x135   :  { %v1656_v10 = vpack.c.bf16 %v1055_v6, %v1054_v4  ;;  %v1736_v11 = vpack.c.bf16 %v1087_v7, %v1086_v5 }
 0x136   :  { %1757 = vst [vmem:[%s2258_s3 + $0x78] sm:$0xff] %v1661_v8   ;;  %1773 = vst [vmem:[%s2258_s3 + $0xf8] sm:$0xff] %v1741_v9  }
 0x137   :  { %1756 = vst [vmem:[%s2258_s3 + $0x70] sm:$0xff] %v1656_v10   ;;  %1772 = vst [vmem:[%s2258_s3 + $0xf0] sm:$0xff] %v1736_v11  }

// kernel: reduction_b_forward.12
= control target key start
LH: loop header
LB: loop body
LE: loop exit
PB: predicated region body
PF: predicated region fallthrough
CT: control target
= control target key end

     0   :  { %v454_v0 = vmov 0.0   ;;  %vm455_vm0 = vmmov 0   ;;  %s585_s1 = inlined_call_operand.vmem [shape: bf16[128,128], index: 1, kind: input, shape index: {}]   ;;  %s586_s0 = inlined_call_operand.vmem [shape: bf16[104,128], index: 0, kind: input, shape index: {}]   ;;  %s587_s2 = inlined_call_operand.vmem [shape: f32[1,128], index: 2, kind: input, shape index: {}]   ;;  %s588_s3 = inlined_call_operand.vmem [shape: f32[104,128], index: 3, kind: output, shape index: {}]  }
   0x1   :  { %377 = vmatprep.subr.bf16.mxu0 %v454_v0  ;;  %v439_v1 = vld [vmem:[%s585_s1] sm:$0xff]   ;;  %421 = vmatprep.subr.bf16.mxu1 %v454_v0  ;;  %v440_v2 = vld [vmem:[%s585_s1 + $0x8] sm:$0xff]   ;;  %v441_v3 = vld [vmem:[%s585_s1 + $0x10] sm:$0xff]  }
   0x2   :  { %393 = vmatprep.mubr.msk.bf16.mxu0 %vm455_vm0, %v454_v0  ;;  %409 = vmatprep.mubr.msk.bf16.mxu1 %vm455_vm0, %v454_v0  ;;  %v442_v4 = vld [vmem:[%s585_s1 + $0x18] sm:$0xff]   ;;  %v443_v5 = vld [vmem:[%s585_s1 + $0x20] sm:$0xff]   ;;  %v444_v6 = vld [vmem:[%s585_s1 + $0x28] sm:$0xff]  }
   0x3   :  { %378 = vmatpush3.bf16.msra.mxu0 %v439_v1  ;;  %429 = vmatpush3.bf16.msra.mxu1 %v439_v1  ;;  %v445_v7 = vld [vmem:[%s585_s1 + $0x30] sm:$0xff]   ;;  %v446_v8 = vld [vmem:[%s585_s1 + $0x38] sm:$0xff]   ;;  %v447_v9 = vld [vmem:[%s586_s0] sm:$0xff]  }
   0x4   :  { %379 = vmatprep.subr.bf16.mxu0 %v454_v0  ;;  %422 = vmatprep.subr.bf16.mxu1 %v454_v0  ;;  %v448_v10 = vld [vmem:[%s586_s0 + $0x20] sm:$0xff]   ;;  %v449_v11 = vld [vmem:[%s586_s0 + $0x8] sm:$0xff]   ;;  %v451_v13 = vld [vmem:[%s586_s0 + $0x10] sm:$0xff]  }
   0x5   :  { %v450_v12 = vld [vmem:[%s586_s0 + $0x28] sm:$0xff]   ;;  %v452_v14 = vld [vmem:[%s586_s0 + $0x30] ss:$0 sps:$4 sm:$0xff]   ;;  %v453_v15 = vld [vmem:[%s586_s0 + $0x18] sm:$0xff]  }
   0x6   :  { %v531_v16 = vld [vmem:[%s587_s2] ss:$0 sm:$0xff] }
   0x7   :  { %380 = vmatpush3.bf16.msra.mxu0 %v440_v2  ;;  %430 = vmatpush3.bf16.msra.mxu1 %v440_v2 }
   0x8   :  { %381 = vmatprep.subr.bf16.mxu0 %v454_v0  ;;  %423 = vmatprep.subr.bf16.mxu1 %v454_v0 }
   0xb   :  { %382 = vmatpush3.bf16.msra.mxu0 %v441_v3  ;;  %431 = vmatpush3.bf16.msra.mxu1 %v441_v3 }
   0xc   :  { %383 = vmatprep.subr.bf16.mxu0 %v454_v0  ;;  %424 = vmatprep.subr.bf16.mxu1 %v454_v0 }
   0xf   :  { %384 = vmatpush3.bf16.msra.mxu0 %v442_v4  ;;  %432 = vmatpush3.bf16.msra.mxu1 %v442_v4 }
  0x10   :  { %385 = vmatprep.subr.bf16.mxu0 %v454_v0  ;;  %425 = vmatprep.subr.bf16.mxu1 %v454_v0 }
  0x13   :  { %386 = vmatpush3.bf16.msra.mxu0 %v443_v5  ;;  %433 = vmatpush3.bf16.msra.mxu1 %v443_v5 }
  0x14   :  { %387 = vmatprep.subr.bf16.mxu0 %v454_v0  ;;  %426 = vmatprep.subr.bf16.mxu1 %v454_v0 }
  0x17   :  { %388 = vmatpush3.bf16.msra.mxu0 %v444_v6  ;;  %434 = vmatpush3.bf16.msra.mxu1 %v444_v6 }
  0x18   :  { %389 = vmatprep.subr.bf16.mxu0 %v454_v0  ;;  %427 = vmatprep.subr.bf16.mxu1 %v454_v0 }
  0x1b   :  { %390 = vmatpush3.bf16.msra.mxu0 %v445_v7  ;;  %435 = vmatpush3.bf16.msra.mxu1 %v445_v7 }
  0x1c   :  { %391 = vmatprep.subr.bf16.mxu0 %v454_v0  ;;  %428 = vmatprep.subr.bf16.mxu1 %v454_v0 }
  0x1f   :  { %392 = vmatpush3.bf16.msra.mxu0 %v446_v8  ;;  %436 = vmatpush3.bf16.msra.mxu1 %v446_v8 }
  0x22   :  { %394 = vmatmul.mubr.bf16.vlgmr.msra.gmra.mrb[0].mxu0 %v447_v9  ;;  %410 = vmatmul.mubr.bf16.vlgmr.msra.gmra.mrb[0].mxu1 %v448_v10 }
  0x23   :  { %397 = vmatprep.mubr.msk.bf16.mxu0 %vm455_vm0, %v454_v0  ;;  %413 = vmatprep.mubr.msk.bf16.mxu1 %vm455_vm0, %v454_v0 }
  0x2a   :  { %398 = vmatmul.mubr.bf16.gmra.mrb[4].mxu0 %v449_v11  ;;  %414 = vmatmul.mubr.bf16.gmra.mrb[4].mxu1 %v450_v12 }
  0x2b   :  { %401 = vmatprep.mubr.msk.bf16.mxu0 %vm455_vm0, %v454_v0  ;;  %417 = vmatprep.mubr.msk.bf16.mxu1 %vm455_vm0, %v454_v0 }
  0x32   :  { %402 = vmatmul.mubr.bf16.gmra.mrb[8].mxu0 %v451_v13  ;;  %418 = vmatmul.mubr.bf16.gmra.mrb[8].mxu1 %v452_v14 }
  0x33   :  { %405 = vmatprep.mubr.msk.bf16.mxu0 %vm455_vm0, %v454_v0 }
  0x3a   :  { %406 = vmatmul.mubr.bf16.gmra.mrb[12].mxu0 %v453_v15 }
  0xf5   :  { %v166_v17 = vpop.f32.mrb[0].mxu0  ;;  %v198_v18 = vpop.f32.mrb[0].mxu1 }
  0xf6   :  { %v303_v19 = vadd.f32 %v531_v16, %v166_v17  ;;  %v395_v20 = vpop.f32.mrb[1].mxu0  ;;  %v311_v21 = vadd.f32 %v531_v16, %v198_v18  ;;  %v411_v22 = vpop.f32.mrb[1].mxu1 }
  0xf7   :  { %v169_v23 = vpop.f32.mrb[2].mxu0  ;;  %v201_v24 = vpop.f32.mrb[2].mxu1 }
  0xf8   :  { %v316_v25 = vmax.f32 %v303_v19, 0.0  ;;  %v304_v26 = vadd.f32 %v531_v16, %v169_v23  ;;  %v396_v27 = vpop.f32.mrb[3].mxu0  ;;  %v324_v28 = vmax.f32 %v311_v21, 0.0  ;;  %v312_v29 = vadd.f32 %v531_v16, %v201_v24  ;;  %v412_v30 = vpop.f32.mrb[3].mxu1 }
  0xfa   :  { %329 = vst [vmem:[%s588_s3] sm:$0xff] %v316_v25  ;;  %v317_v31 = vmax.f32 %v304_v26, 0.0  ;;  %337 = vst [vmem:[%s588_s3 + $0x40] sm:$0xff] %v324_v28  ;;  %v325_v32 = vmax.f32 %v312_v29, 0.0 }
  0xfc   :  { %330 = vst [vmem:[%s588_s3 + $0x8] sm:$0xff] %v317_v31  ;;  %338 = vst [vmem:[%s588_s3 + $0x48] sm:$0xff] %v325_v32 }
  0xfd   :  { %v174_v33 = vpop.f32.mrb[4].mxu0  ;;  %v206_v34 = vpop.f32.mrb[4].mxu1 }
  0xfe   :  { %v305_v35 = vadd.f32 %v531_v16, %v174_v33  ;;  %v399_v36 = vpop.f32.mrb[5].mxu0  ;;  %v313_v37 = vadd.f32 %v531_v16, %v206_v34  ;;  %v415_v38 = vpop.f32.mrb[5].mxu1 }
  0xff   :  { %v177_v39 = vpop.f32.mrb[6].mxu0  ;;  %v209_v40 = vpop.f32.mrb[6].mxu1 }
 0x100   :  { %v318_v41 = vmax.f32 %v305_v35, 0.0  ;;  %v306_v42 = vadd.f32 %v531_v16, %v177_v39  ;;  %v400_v43 = vpop.f32.mrb[7].mxu0  ;;  %v326_v44 = vmax.f32 %v313_v37, 0.0  ;;  %v314_v45 = vadd.f32 %v531_v16, %v209_v40  ;;  %v416_v46 = vpop.f32.mrb[7].mxu1 }
 0x102   :  { %331 = vst [vmem:[%s588_s3 + $0x10] sm:$0xff] %v318_v41  ;;  %v319_v47 = vmax.f32 %v306_v42, 0.0  ;;  %339 = vst [vmem:[%s588_s3 + $0x50] sm:$0xff] %v326_v44  ;;  %v327_v48 = vmax.f32 %v314_v45, 0.0 }
 0x104   :  { %332 = vst [vmem:[%s588_s3 + $0x18] sm:$0xff] %v319_v47  ;;  %340 = vst [vmem:[%s588_s3 + $0x58] sm:$0xff] %v327_v48 }
 0x105   :  { %v182_v49 = vpop.f32.mrb[8].mxu0  ;;  %v214_v50 = vpop.f32.mrb[8].mxu1 }
 0x106   :  { %v307_v51 = vadd.f32 %v531_v16, %v182_v49  ;;  %v403_v52 = vpop.f32.mrb[9].mxu0  ;;  %v315_v53 = vadd.f32 %v531_v16, %v214_v50  ;;  %v419_v54 = vpop.f32.mrb[9].mxu1 }
 0x107   :  { %v185_v55 = vpop.f32.mrb[10].mxu0  ;;  %v217_v56 = vpop.f32.mrb[10].mxu1 }
 0x108   :  { %v320_v57 = vmax.f32 %v307_v51, 0.0  ;;  %v308_v58 = vadd.f32 %v531_v16, %v185_v55  ;;  %v404_v59 = vpop.f32.mrb[11].mxu0  ;;  %v328_v60 = vmax.f32 %v315_v53, 0.0  ;;  %v420_v61 = vpop.f32.mrb[11].mxu1 }
 0x10a   :  { %333 = vst [vmem:[%s588_s3 + $0x20] sm:$0xff] %v320_v57  ;;  %v321_v62 = vmax.f32 %v308_v58, 0.0  ;;  %341 = vst [vmem:[%s588_s3 + $0x60] sm:$0xff] %v328_v60 }
 0x10c   :  { %334 = vst [vmem:[%s588_s3 + $0x28] sm:$0xff] %v321_v62 }
 0x10d   :  { %v190_v63 = vpop.f32.mrb[12].mxu0 }
 0x10e   :  { %v309_v0 = vadd.f32 %v531_v16, %v190_v63  ;;  %v407_v1 = vpop.f32.mrb[13].mxu0 }
 0x10f   :  { %v193_v2 = vpop.f32.mrb[14].mxu0 }
 0x110   :  { %v322_v3 = vmax.f32 %v309_v0, 0.0  ;;  %v310_v4 = vadd.f32 %v531_v16, %v193_v2  ;;  %v408_v5 = vpop.f32.mrb[15].mxu0 }
 0x112   :  { %335 = vst [vmem:[%s588_s3 + $0x30] sm:$0xff] %v322_v3  ;;  %v323_v6 = vmax.f32 %v310_v4, 0.0 }
 0x114   :  { %336 = vst [vmem:[%s588_s3 + $0x38] sm:$0xff] %v323_v6 }

</bundles_post_ra>
